<compile_context>
chip_gen: v5e
topology: v5e:2x2
jax: 0.10.0
libtpu: 0.0.40
codegen_flags: <defaults>
</compile_context>

<pallas_src>
import numpy as np
import jax
import jax.numpy as jnp
from jax.experimental import pallas as pl
from jax.experimental.pallas import tpu as pltpu


def _make_inception_kernel(H, W, Bt):
    HW = H * W

    def shift_flat(a, s):
        # out[..., m] = a[..., m + s] for 0 <= m + s < HW, else 0.  (static s)
        if s == 0:
            return a
        pad = jnp.zeros(a.shape[:-1] + (abs(s),), a.dtype)
        if s > 0:
            return jnp.concatenate([a[..., s:], pad], axis=-1)
        return jnp.concatenate([pad, a[..., :s]], axis=-1)

    def kernel(x_ref, w1p_ref, b1_ref, bp_ref, w53_ref, b53_ref,
               w3b_ref, b3b_ref, o_ref):
        col = jax.lax.broadcasted_iota(jnp.int32, (1, 1, HW), 2) % W

        def col_mask(a, dx):
            # Zero output columns whose source column x+dx falls outside [0, W)
            # (the flat lane shift wraps across image rows; H-padding is handled
            #  by the zero fill of shift_flat since each lane-row is one image).
            if dx == 0:
                return a
            valid = (col < (W - dx)) if dx > 0 else (col >= (-dx))
            return jnp.where(valid, a, 0.0)

        w1p = w1p_ref[...]                       # (40, Cin)  [branch1x1 | wp/9]
        w53 = w53_ref[...]                       # (48, 400)  [branch5x5 | 3x3_1 embedded]
        w3b = w3b_ref[...]                       # (24, 216)
        b1b, b53b = b1_ref[...], b53_ref[...]    # (16,1), (48,1)
        b3bb, bpb = b3b_ref[...], bp_ref[...]    # (24,1), (24,1)

        # ---- fused 1x1 convs: branch1x1 and (pre-pool, bias-free) branch_pool.
        b1_l, pre_l = [], []
        for b in range(Bt):
            y1 = jnp.dot(w1p, x_ref[b], preferred_element_type=jnp.float32)  # (40, HW)
            b1_l.append(y1[0:16] + b1b)
            pre_l.append(y1[16:40])
        b1 = jnp.stack(b1_l, axis=0)             # (Bt, 16, HW) biased branch1x1
        pre = jnp.stack(pre_l, axis=0)           # (Bt, 24, HW) (wp/9) * x, bias-free

        # ---- branch_pool: separable 3x3 sum (1/9 folded into wp), bias after.
        hs = pre + col_mask(shift_flat(pre, -1), -1) + col_mask(shift_flat(pre, 1), 1)
        bpool = hs + shift_flat(hs, -W) + shift_flat(hs, W) + bpb        # (Bt, 24, HW)

        # ---- branch5x5 + branch3x3_1: one shared channel-major im2col matmul.
        cs5 = {dx: col_mask(shift_flat(b1, dx), dx) for dx in range(-2, 3)}
        slab5 = jnp.concatenate(
            [shift_flat(cs5[kx - 2], (ky - 2) * W)
             for ky in range(5) for kx in range(5)], axis=1)             # (Bt, 400, HW)
        y5_l, a3_l = [], []
        for b in range(Bt):
            y53 = jnp.dot(w53, slab5[b], preferred_element_type=jnp.float32) + b53b
            y5_l.append(y53[0:24])
            a3_l.append(y53[24:48])
        y5 = jnp.stack(y5_l, axis=0)             # (Bt, 24, HW) branch5x5
        a3 = jnp.stack(a3_l, axis=0)             # (Bt, 24, HW) branch3x3_1 (biased)

        # ---- branch3x3_2: second channel-major im2col matmul over a3.
        cs3 = {dx: col_mask(shift_flat(a3, dx), dx) for dx in range(-1, 2)}
        slab3 = jnp.concatenate(
            [shift_flat(cs3[kx - 1], (ky - 1) * W)
             for ky in range(3) for kx in range(3)], axis=1)             # (Bt, 216, HW)
        y3_l = []
        for b in range(Bt):
            y3_l.append(jnp.dot(w3b, slab3[b],
                                preferred_element_type=jnp.float32) + b3bb)
        y3 = jnp.stack(y3_l, axis=0)             # (Bt, 24, HW)

        # ---- single fused, lane-dense output store (channel concat in-register).
        o_ref[...] = jnp.concatenate([b1, y5, y3, bpool], axis=1)        # (Bt, 88, HW)

    return kernel


@jax.jit
def inception_a(x_nchw, params):
    """Pallas InceptionA. Input/output are NCHW float32 (like PyTorch)."""
    N, Cin, H, W = x_nchw.shape
    HW = H * W
    x = x_nchw.reshape(N, Cin, HW).astype(jnp.float32)   # NCHW -> (N, C, H*W): free

    w1, b1, w5, b5, w3a, b3a, w3b, b3b, wp, bp = params

    # Channel-major matmul weights, built once outside the kernel.
    # Fold the 3x3 avg-pool's 1/9 into wp (pool commutes with the bias-free 1x1).
    w1p = jnp.concatenate(
        [w1[:, :, 0, 0], wp[:, :, 0, 0] * (1.0 / 9.0)], axis=0).astype(jnp.float32)
    w5m = jnp.transpose(w5, (0, 2, 3, 1)).reshape(24, 5 * 5 * 16)
    w3a_e = jnp.transpose(jnp.pad(w3a, ((0, 0), (0, 0), (1, 1), (1, 1))),
                          (0, 2, 3, 1)).reshape(24, 5 * 5 * 16)
    w53 = jnp.concatenate([w5m, w3a_e], axis=0).astype(jnp.float32)      # (48, 400)
    w3bm = jnp.transpose(w3b, (0, 2, 3, 1)).reshape(24, 3 * 3 * 24).astype(jnp.float32)

    b1m = b1.reshape(16, 1).astype(jnp.float32)
    bpm = bp.reshape(24, 1).astype(jnp.float32)
    b53m = jnp.concatenate([b5, b3a]).reshape(48, 1).astype(jnp.float32)
    b3bm = b3b.reshape(24, 1).astype(jnp.float32)

    # Images per grid step: largest divisor of N under a conservative pixel
    # budget, while keeping >= 2 grid steps when N >= 2 (so both v7x TensorCores
    # get work).  4096 px/step + 48 MiB limit fits every generation (v7x 64 MiB/TC
    # included); v5e/v6e could raise both for extra per-step amortization.
    max_pix = 4096
    limit = min(N, max(1, max_pix // HW))
    if N >= 2:
        limit = min(limit, max(1, N // 2))
    bt = 1
    for cand in range(limit, 0, -1):
        if N % cand == 0:
            bt = cand
            break

    def full(a):
        return pl.BlockSpec(a.shape, lambda n: (0,) * a.ndim)

    out = pl.pallas_call(
        _make_inception_kernel(H, W, bt),
        out_shape=jax.ShapeDtypeStruct((N, 88, HW), jnp.float32),
        grid_spec=pltpu.PrefetchScalarGridSpec(
            num_scalar_prefetch=0,
            grid=(N // bt,),
            in_specs=[
                pl.BlockSpec((bt, Cin, HW), lambda n: (n, 0, 0)),
                full(w1p), full(b1m), full(bpm),
                full(w53), full(b53m), full(w3bm), full(b3bm),
            ],
            out_specs=pl.BlockSpec((bt, 88, HW), lambda n: (n, 0, 0)),
        ),
        compiler_params=pltpu.CompilerParams(
            dimension_semantics=("parallel",),     # batch steps independent
            vmem_limit_bytes=48 * 1024 * 1024,
        ),
    )(x, w1p, b1m, bpm, w53, b53m, w3bm, b3bm)

    return out.reshape(N, 88, H, W)                # already NCHW; reshape only


def inception_a_ref(x, params):
    """Pure-JAX reference (lax convs, NCHW) mirroring the PyTorch forward."""
    w1, b1, w5, b5, w3a, b3a, w3b, b3b, wp, bp = params
    dn = ('NCHW', 'OIHW', 'NCHW')

    def conv(v, w, b, pad):
        y = jax.lax.conv_general_dilated(
            v, w, window_strides=(1, 1),
            padding=[(pad, pad), (pad, pad)], dimension_numbers=dn)
        return y + b.reshape(1, -1, 1, 1)

    pooled = jax.lax.reduce_window(
        x, 0.0, jax.lax.add, (1, 1, 3, 3), (1, 1, 1, 1),
        ((0, 0), (0, 0), (1, 1), (1, 1))) / 9.0
    branch_pool = conv(pooled, wp, bp, 0)
    b1x1 = conv(x, w1, b1, 0)
    b5x5 = conv(b1x1, w5, b5, 2)
    b3x3 = conv(conv(b1x1, w3a, b3a, 1), w3b, b3b, 1)
    return jnp.concatenate([b1x1, b5x5, b3x3, branch_pool], axis=1)


if __name__ == "__main__":
    key = jax.random.PRNGKey(0)
    N, Cin, H, W = 2, 4, 16, 16
    keys = jax.random.split(key, 11)

    x = jax.random.normal(keys[0], (N, Cin, H, W), jnp.float32)
    params = (
        0.1 * jax.random.normal(keys[1], (16, Cin, 1, 1), jnp.float32),   # branch1x1 w
        0.1 * jax.random.normal(keys[2], (16,), jnp.float32),             # branch1x1 b
        0.1 * jax.random.normal(keys[3], (24, 16, 5, 5), jnp.float32),    # branch5x5 w
        0.1 * jax.random.normal(keys[4], (24,), jnp.float32),             # branch5x5 b
        0.1 * jax.random.normal(keys[5], (24, 16, 3, 3), jnp.float32),    # branch3x3_1 w
        0.1 * jax.random.normal(keys[6], (24,), jnp.float32),             # branch3x3_1 b
        0.1 * jax.random.normal(keys[7], (24, 24, 3, 3), jnp.float32),    # branch3x3_2 w
        0.1 * jax.random.normal(keys[8], (24,), jnp.float32),             # branch3x3_2 b
        0.1 * jax.random.normal(keys[9], (24, Cin, 1, 1), jnp.float32),   # branch_pool w
        0.1 * jax.random.normal(keys[10], (24,), jnp.float32),            # branch_pool b
    )

    out = jax.block_until_ready(inception_a(x, params))
    assert out.shape == (N, 88, H, W), out.shape

    ref = jax.block_until_ready(inception_a_ref(x, params))
    np.testing.assert_allclose(np.asarray(out), np.asarray(ref),
                               atol=5e-4, rtol=5e-4)
    print("KERNEL_OK")
</pallas_src>

<mosaic_0001>
module attributes {stable_mosaic.version = 11 : i64} {
  func.func @kernel(%arg0: i32, %arg1: memref<1x4x256xf32, #tpu.memory_space<vmem>>, %arg2: memref<40x4xf32, #tpu.memory_space<vmem>>, %arg3: memref<16x1xf32, #tpu.memory_space<vmem>>, %arg4: memref<24x1xf32, #tpu.memory_space<vmem>>, %arg5: memref<48x400xf32, #tpu.memory_space<vmem>>, %arg6: memref<48x1xf32, #tpu.memory_space<vmem>>, %arg7: memref<24x216xf32, #tpu.memory_space<vmem>>, %arg8: memref<24x1xf32, #tpu.memory_space<vmem>>, %arg9: memref<1x88x256xf32, #tpu.memory_space<vmem>>) attributes {dimension_semantics = [#tpu.dimension_semantics<parallel>], iteration_bounds = array<i64: 2>, scalar_prefetch = 0 : i64, scratch_operands = 0 : i64, tpu.core_type = #tpu.core_type<tc>, window_params = [{transform_indices = @transform_0, window_bounds = array<i64: 1, 4, 256>}, {pipeline_mode = #tpu.pipeline_mode<synchronous>, transform_indices = @transform_1, window_bounds = array<i64: 40, 4>}, {pipeline_mode = #tpu.pipeline_mode<synchronous>, transform_indices = @transform_2, window_bounds = array<i64: 16, 1>}, {pipeline_mode = #tpu.pipeline_mode<synchronous>, transform_indices = @transform_3, window_bounds = array<i64: 24, 1>}, {pipeline_mode = #tpu.pipeline_mode<synchronous>, transform_indices = @transform_4, window_bounds = array<i64: 48, 400>}, {pipeline_mode = #tpu.pipeline_mode<synchronous>, transform_indices = @transform_5, window_bounds = array<i64: 48, 1>}, {pipeline_mode = #tpu.pipeline_mode<synchronous>, transform_indices = @transform_6, window_bounds = array<i64: 24, 216>}, {pipeline_mode = #tpu.pipeline_mode<synchronous>, transform_indices = @transform_7, window_bounds = array<i64: 24, 1>}, {transform_indices = @transform_8, window_bounds = array<i64: 1, 88, 256>}]} {
    %0 = tpu.iota {dimensions = array<i32: 2>} : vector<1x1x256xi32>
    %c16_i32 = arith.constant 16 : i32
    %c0_i32 = arith.constant 0 : i32
    %1 = arith.cmpi eq, %c16_i32, %c0_i32 : i32
    %c1_i32 = arith.constant 1 : i32
    %2 = arith.select %1, %c1_i32, %c16_i32 : i32
    %3 = vector.broadcast %2 : i32 to vector<1x1x256xi32>
    %4 = arith.remsi %0, %3 : vector<1x1x256xi32>
    %c0_i32_0 = arith.constant 0 : i32
    %5 = vector.broadcast %c0_i32_0 : i32 to vector<1x1x256xi32>
    %6 = arith.cmpi ne, %4, %5 : vector<1x1x256xi32>
    %c0_i32_1 = arith.constant 0 : i32
    %7 = vector.broadcast %c0_i32_1 : i32 to vector<1x1x256xi32>
    %8 = arith.cmpi slt, %4, %7 : vector<1x1x256xi32>
    %c0_i32_2 = arith.constant 0 : i32
    %9 = arith.cmpi slt, %2, %c0_i32_2 : i32
    %10 = vector.broadcast %9 : i1 to vector<1x1x256xi1>
    %11 = vector.broadcast %10 : vector<1x1x256xi1> to vector<1x1x256xi1>
    %12 = arith.xori %8, %11 : vector<1x1x256xi1>
    %13 = arith.andi %12, %6 : vector<1x1x256xi1>
    %14 = vector.broadcast %2 : i32 to vector<1x1x256xi32>
    %15 = arith.addi %4, %14 : vector<1x1x256xi32>
    %16 = arith.select %13, %15, %4 : vector<1x1x256xi1>, vector<1x1x256xi32>
    %c0 = arith.constant 0 : index
    %c0_3 = arith.constant 0 : index
    %17 = vector.load %arg2[%c0, %c0_3] : memref<40x4xf32, #tpu.memory_space<vmem>>, vector<40x4xf32>
    %c0_4 = arith.constant 0 : index
    %c0_5 = arith.constant 0 : index
    %18 = vector.load %arg5[%c0_4, %c0_5] : memref<48x400xf32, #tpu.memory_space<vmem>>, vector<48x400xf32>
    %c0_6 = arith.constant 0 : index
    %c0_7 = arith.constant 0 : index
    %19 = vector.load %arg7[%c0_6, %c0_7] : memref<24x216xf32, #tpu.memory_space<vmem>>, vector<24x216xf32>
    %c0_8 = arith.constant 0 : index
    %c0_9 = arith.constant 0 : index
    %20 = vector.load %arg3[%c0_8, %c0_9] : memref<16x1xf32, #tpu.memory_space<vmem>>, vector<16x1xf32>
    %c0_10 = arith.constant 0 : index
    %c0_11 = arith.constant 0 : index
    %21 = vector.load %arg6[%c0_10, %c0_11] : memref<48x1xf32, #tpu.memory_space<vmem>>, vector<48x1xf32>
    %c0_12 = arith.constant 0 : index
    %c0_13 = arith.constant 0 : index
    %22 = vector.load %arg8[%c0_12, %c0_13] : memref<24x1xf32, #tpu.memory_space<vmem>>, vector<24x1xf32>
    %c0_14 = arith.constant 0 : index
    %c0_15 = arith.constant 0 : index
    %23 = vector.load %arg4[%c0_14, %c0_15] : memref<24x1xf32, #tpu.memory_space<vmem>>, vector<24x1xf32>
    %c0_16 = arith.constant 0 : index
    %c0_17 = arith.constant 0 : index
    %c0_18 = arith.constant 0 : index
    %24 = vector.load %arg1[%c0_16, %c0_17, %c0_18] : memref<1x4x256xf32, #tpu.memory_space<vmem>>, vector<1x4x256xf32>
    %25 = vector.shape_cast %24 : vector<1x4x256xf32> to vector<4x256xf32>
    %cst = arith.constant dense<0.000000e+00> : vector<40x256xf32>
    %26 = tpu.matmul %17, %25, %cst {dimension_numbers = #tpu.dot_dimension_numbers<[1], [0], [0], [1], [0, 0, 1, 1], [], []>} : vector<40x4xf32>, vector<4x256xf32>, vector<40x256xf32> -> vector<40x256xf32>
    %27 = vector.extract_strided_slice %26 {offsets = [0, 0], sizes = [16, 256], strides = [1, 1]} : vector<40x256xf32> to vector<16x256xf32>
    %28 = vector.broadcast %20 : vector<16x1xf32> to vector<16x256xf32>
    %29 = arith.addf %27, %28 : vector<16x256xf32>
    %30 = vector.extract_strided_slice %26 {offsets = [16, 0], sizes = [24, 256], strides = [1, 1]} : vector<40x256xf32> to vector<24x256xf32>
    %31 = vector.shape_cast %29 : vector<16x256xf32> to vector<1x16x256xf32>
    %32 = vector.shape_cast %30 : vector<24x256xf32> to vector<1x24x256xf32>
    %cst_19 = arith.constant 0.000000e+00 : f32
    %33 = vector.broadcast %cst_19 : f32 to vector<1x24x1xf32>
    %34 = vector.extract_strided_slice %32 {offsets = [0, 0, 0], sizes = [1, 24, 255], strides = [1, 1, 1]} : vector<1x24x256xf32> to vector<1x24x255xf32>
    %35 = tpu.concatenate %33, %34 in 2 : vector<1x24x1xf32>, vector<1x24x255xf32> -> vector<1x24x256xf32>
    %c1_i32_20 = arith.constant 1 : i32
    %36 = vector.broadcast %c1_i32_20 : i32 to vector<1x1x256xi32>
    %37 = arith.cmpi sge, %16, %36 : vector<1x1x256xi32>
    %cst_21 = arith.constant 0.000000e+00 : f32
    %38 = vector.shape_cast %37 : vector<1x1x256xi1> to vector<1x1x256xi1>
    %39 = vector.broadcast %38 : vector<1x1x256xi1> to vector<1x24x256xi1>
    %40 = vector.broadcast %cst_21 : f32 to vector<1x24x256xf32>
    %41 = arith.select %39, %35, %40 : vector<1x24x256xi1>, vector<1x24x256xf32>
    %42 = arith.addf %32, %41 : vector<1x24x256xf32>
    %cst_22 = arith.constant 0.000000e+00 : f32
    %43 = vector.broadcast %cst_22 : f32 to vector<1x24x1xf32>
    %44 = vector.extract_strided_slice %32 {offsets = [0, 0, 1], sizes = [1, 24, 255], strides = [1, 1, 1]} : vector<1x24x256xf32> to vector<1x24x255xf32>
    %45 = tpu.concatenate %44, %43 in 2 : vector<1x24x255xf32>, vector<1x24x1xf32> -> vector<1x24x256xf32>
    %c15_i32 = arith.constant 15 : i32
    %46 = vector.broadcast %c15_i32 : i32 to vector<1x1x256xi32>
    %47 = arith.cmpi slt, %16, %46 : vector<1x1x256xi32>
    %cst_23 = arith.constant 0.000000e+00 : f32
    %48 = vector.shape_cast %47 : vector<1x1x256xi1> to vector<1x1x256xi1>
    %49 = vector.broadcast %48 : vector<1x1x256xi1> to vector<1x24x256xi1>
    %50 = vector.broadcast %cst_23 : f32 to vector<1x24x256xf32>
    %51 = arith.select %49, %45, %50 : vector<1x24x256xi1>, vector<1x24x256xf32>
    %52 = arith.addf %42, %51 : vector<1x24x256xf32>
    %cst_24 = arith.constant 0.000000e+00 : f32
    %53 = vector.broadcast %cst_24 : f32 to vector<1x24x16xf32>
    %54 = vector.extract_strided_slice %52 {offsets = [0, 0, 0], sizes = [1, 24, 240], strides = [1, 1, 1]} : vector<1x24x256xf32> to vector<1x24x240xf32>
    %55 = tpu.concatenate %53, %54 in 2 : vector<1x24x16xf32>, vector<1x24x240xf32> -> vector<1x24x256xf32>
    %56 = arith.addf %52, %55 : vector<1x24x256xf32>
    %cst_25 = arith.constant 0.000000e+00 : f32
    %57 = vector.broadcast %cst_25 : f32 to vector<1x24x16xf32>
    %58 = vector.extract_strided_slice %52 {offsets = [0, 0, 16], sizes = [1, 24, 240], strides = [1, 1, 1]} : vector<1x24x256xf32> to vector<1x24x240xf32>
    %59 = tpu.concatenate %58, %57 in 2 : vector<1x24x240xf32>, vector<1x24x16xf32> -> vector<1x24x256xf32>
    %60 = arith.addf %56, %59 : vector<1x24x256xf32>
    %61 = vector.shape_cast %23 : vector<24x1xf32> to vector<1x24x1xf32>
    %62 = vector.broadcast %61 : vector<1x24x1xf32> to vector<1x24x256xf32>
    %63 = arith.addf %60, %62 : vector<1x24x256xf32>
    %cst_26 = arith.constant 0.000000e+00 : f32
    %64 = vector.broadcast %cst_26 : f32 to vector<1x16x2xf32>
    %65 = vector.extract_strided_slice %31 {offsets = [0, 0, 0], sizes = [1, 16, 254], strides = [1, 1, 1]} : vector<1x16x256xf32> to vector<1x16x254xf32>
    %66 = tpu.concatenate %64, %65 in 2 : vector<1x16x2xf32>, vector<1x16x254xf32> -> vector<1x16x256xf32>
    %c2_i32 = arith.constant 2 : i32
    %67 = vector.broadcast %c2_i32 : i32 to vector<1x1x256xi32>
    %68 = arith.cmpi sge, %16, %67 : vector<1x1x256xi32>
    %cst_27 = arith.constant 0.000000e+00 : f32
    %69 = vector.shape_cast %68 : vector<1x1x256xi1> to vector<1x1x256xi1>
    %70 = vector.broadcast %69 : vector<1x1x256xi1> to vector<1x16x256xi1>
    %71 = vector.broadcast %cst_27 : f32 to vector<1x16x256xf32>
    %72 = arith.select %70, %66, %71 : vector<1x16x256xi1>, vector<1x16x256xf32>
    %cst_28 = arith.constant 0.000000e+00 : f32
    %73 = vector.broadcast %cst_28 : f32 to vector<1x16x1xf32>
    %74 = vector.extract_strided_slice %31 {offsets = [0, 0, 0], sizes = [1, 16, 255], strides = [1, 1, 1]} : vector<1x16x256xf32> to vector<1x16x255xf32>
    %75 = tpu.concatenate %73, %74 in 2 : vector<1x16x1xf32>, vector<1x16x255xf32> -> vector<1x16x256xf32>
    %c1_i32_29 = arith.constant 1 : i32
    %76 = vector.broadcast %c1_i32_29 : i32 to vector<1x1x256xi32>
    %77 = arith.cmpi sge, %16, %76 : vector<1x1x256xi32>
    %cst_30 = arith.constant 0.000000e+00 : f32
    %78 = vector.shape_cast %77 : vector<1x1x256xi1> to vector<1x1x256xi1>
    %79 = vector.broadcast %78 : vector<1x1x256xi1> to vector<1x16x256xi1>
    %80 = vector.broadcast %cst_30 : f32 to vector<1x16x256xf32>
    %81 = arith.select %79, %75, %80 : vector<1x16x256xi1>, vector<1x16x256xf32>
    %cst_31 = arith.constant 0.000000e+00 : f32
    %82 = vector.broadcast %cst_31 : f32 to vector<1x16x1xf32>
    %83 = vector.extract_strided_slice %31 {offsets = [0, 0, 1], sizes = [1, 16, 255], strides = [1, 1, 1]} : vector<1x16x256xf32> to vector<1x16x255xf32>
    %84 = tpu.concatenate %83, %82 in 2 : vector<1x16x255xf32>, vector<1x16x1xf32> -> vector<1x16x256xf32>
    %c15_i32_32 = arith.constant 15 : i32
    %85 = vector.broadcast %c15_i32_32 : i32 to vector<1x1x256xi32>
    %86 = arith.cmpi slt, %16, %85 : vector<1x1x256xi32>
    %cst_33 = arith.constant 0.000000e+00 : f32
    %87 = vector.shape_cast %86 : vector<1x1x256xi1> to vector<1x1x256xi1>
    %88 = vector.broadcast %87 : vector<1x1x256xi1> to vector<1x16x256xi1>
    %89 = vector.broadcast %cst_33 : f32 to vector<1x16x256xf32>
    %90 = arith.select %88, %84, %89 : vector<1x16x256xi1>, vector<1x16x256xf32>
    %cst_34 = arith.constant 0.000000e+00 : f32
    %91 = vector.broadcast %cst_34 : f32 to vector<1x16x2xf32>
    %92 = vector.extract_strided_slice %31 {offsets = [0, 0, 2], sizes = [1, 16, 254], strides = [1, 1, 1]} : vector<1x16x256xf32> to vector<1x16x254xf32>
    %93 = tpu.concatenate %92, %91 in 2 : vector<1x16x254xf32>, vector<1x16x2xf32> -> vector<1x16x256xf32>
    %c14_i32 = arith.constant 14 : i32
    %94 = vector.broadcast %c14_i32 : i32 to vector<1x1x256xi32>
    %95 = arith.cmpi slt, %16, %94 : vector<1x1x256xi32>
    %cst_35 = arith.constant 0.000000e+00 : f32
    %96 = vector.shape_cast %95 : vector<1x1x256xi1> to vector<1x1x256xi1>
    %97 = vector.broadcast %96 : vector<1x1x256xi1> to vector<1x16x256xi1>
    %98 = vector.broadcast %cst_35 : f32 to vector<1x16x256xf32>
    %99 = arith.select %97, %93, %98 : vector<1x16x256xi1>, vector<1x16x256xf32>
    %cst_36 = arith.constant 0.000000e+00 : f32
    %100 = vector.broadcast %cst_36 : f32 to vector<1x16x32xf32>
    %101 = vector.extract_strided_slice %72 {offsets = [0, 0, 0], sizes = [1, 16, 224], strides = [1, 1, 1]} : vector<1x16x256xf32> to vector<1x16x224xf32>
    %102 = tpu.concatenate %100, %101 in 2 : vector<1x16x32xf32>, vector<1x16x224xf32> -> vector<1x16x256xf32>
    %cst_37 = arith.constant 0.000000e+00 : f32
    %103 = vector.broadcast %cst_37 : f32 to vector<1x16x32xf32>
    %104 = vector.extract_strided_slice %81 {offsets = [0, 0, 0], sizes = [1, 16, 224], strides = [1, 1, 1]} : vector<1x16x256xf32> to vector<1x16x224xf32>
    %105 = tpu.concatenate %103, %104 in 2 : vector<1x16x32xf32>, vector<1x16x224xf32> -> vector<1x16x256xf32>
    %cst_38 = arith.constant 0.000000e+00 : f32
    %106 = vector.broadcast %cst_38 : f32 to vector<1x16x32xf32>
    %107 = vector.extract_strided_slice %31 {offsets = [0, 0, 0], sizes = [1, 16, 224], strides = [1, 1, 1]} : vector<1x16x256xf32> to vector<1x16x224xf32>
    %108 = tpu.concatenate %106, %107 in 2 : vector<1x16x32xf32>, vector<1x16x224xf32> -> vector<1x16x256xf32>
    %cst_39 = arith.constant 0.000000e+00 : f32
    %109 = vector.broadcast %cst_39 : f32 to vector<1x16x32xf32>
    %110 = vector.extract_strided_slice %90 {offsets = [0, 0, 0], sizes = [1, 16, 224], strides = [1, 1, 1]} : vector<1x16x256xf32> to vector<1x16x224xf32>
    %111 = tpu.concatenate %109, %110 in 2 : vector<1x16x32xf32>, vector<1x16x224xf32> -> vector<1x16x256xf32>
    %cst_40 = arith.constant 0.000000e+00 : f32
    %112 = vector.broadcast %cst_40 : f32 to vector<1x16x32xf32>
    %113 = vector.extract_strided_slice %99 {offsets = [0, 0, 0], sizes = [1, 16, 224], strides = [1, 1, 1]} : vector<1x16x256xf32> to vector<1x16x224xf32>
    %114 = tpu.concatenate %112, %113 in 2 : vector<1x16x32xf32>, vector<1x16x224xf32> -> vector<1x16x256xf32>
    %cst_41 = arith.constant 0.000000e+00 : f32
    %115 = vector.broadcast %cst_41 : f32 to vector<1x16x16xf32>
    %116 = vector.extract_strided_slice %72 {offsets = [0, 0, 0], sizes = [1, 16, 240], strides = [1, 1, 1]} : vector<1x16x256xf32> to vector<1x16x240xf32>
    %117 = tpu.concatenate %115, %116 in 2 : vector<1x16x16xf32>, vector<1x16x240xf32> -> vector<1x16x256xf32>
    %cst_42 = arith.constant 0.000000e+00 : f32
    %118 = vector.broadcast %cst_42 : f32 to vector<1x16x16xf32>
    %119 = vector.extract_strided_slice %81 {offsets = [0, 0, 0], sizes = [1, 16, 240], strides = [1, 1, 1]} : vector<1x16x256xf32> to vector<1x16x240xf32>
    %120 = tpu.concatenate %118, %119 in 2 : vector<1x16x16xf32>, vector<1x16x240xf32> -> vector<1x16x256xf32>
    %cst_43 = arith.constant 0.000000e+00 : f32
    %121 = vector.broadcast %cst_43 : f32 to vector<1x16x16xf32>
    %122 = vector.extract_strided_slice %31 {offsets = [0, 0, 0], sizes = [1, 16, 240], strides = [1, 1, 1]} : vector<1x16x256xf32> to vector<1x16x240xf32>
    %123 = tpu.concatenate %121, %122 in 2 : vector<1x16x16xf32>, vector<1x16x240xf32> -> vector<1x16x256xf32>
    %cst_44 = arith.constant 0.000000e+00 : f32
    %124 = vector.broadcast %cst_44 : f32 to vector<1x16x16xf32>
    %125 = vector.extract_strided_slice %90 {offsets = [0, 0, 0], sizes = [1, 16, 240], strides = [1, 1, 1]} : vector<1x16x256xf32> to vector<1x16x240xf32>
    %126 = tpu.concatenate %124, %125 in 2 : vector<1x16x16xf32>, vector<1x16x240xf32> -> vector<1x16x256xf32>
    %cst_45 = arith.constant 0.000000e+00 : f32
    %127 = vector.broadcast %cst_45 : f32 to vector<1x16x16xf32>
    %128 = vector.extract_strided_slice %99 {offsets = [0, 0, 0], sizes = [1, 16, 240], strides = [1, 1, 1]} : vector<1x16x256xf32> to vector<1x16x240xf32>
    %129 = tpu.concatenate %127, %128 in 2 : vector<1x16x16xf32>, vector<1x16x240xf32> -> vector<1x16x256xf32>
    %cst_46 = arith.constant 0.000000e+00 : f32
    %130 = vector.broadcast %cst_46 : f32 to vector<1x16x16xf32>
    %131 = vector.extract_strided_slice %72 {offsets = [0, 0, 16], sizes = [1, 16, 240], strides = [1, 1, 1]} : vector<1x16x256xf32> to vector<1x16x240xf32>
    %132 = tpu.concatenate %131, %130 in 2 : vector<1x16x240xf32>, vector<1x16x16xf32> -> vector<1x16x256xf32>
    %cst_47 = arith.constant 0.000000e+00 : f32
    %133 = vector.broadcast %cst_47 : f32 to vector<1x16x16xf32>
    %134 = vector.extract_strided_slice %81 {offsets = [0, 0, 16], sizes = [1, 16, 240], strides = [1, 1, 1]} : vector<1x16x256xf32> to vector<1x16x240xf32>
    %135 = tpu.concatenate %134, %133 in 2 : vector<1x16x240xf32>, vector<1x16x16xf32> -> vector<1x16x256xf32>
    %cst_48 = arith.constant 0.000000e+00 : f32
    %136 = vector.broadcast %cst_48 : f32 to vector<1x16x16xf32>
    %137 = vector.extract_strided_slice %31 {offsets = [0, 0, 16], sizes = [1, 16, 240], strides = [1, 1, 1]} : vector<1x16x256xf32> to vector<1x16x240xf32>
    %138 = tpu.concatenate %137, %136 in 2 : vector<1x16x240xf32>, vector<1x16x16xf32> -> vector<1x16x256xf32>
    %cst_49 = arith.constant 0.000000e+00 : f32
    %139 = vector.broadcast %cst_49 : f32 to vector<1x16x16xf32>
    %140 = vector.extract_strided_slice %90 {offsets = [0, 0, 16], sizes = [1, 16, 240], strides = [1, 1, 1]} : vector<1x16x256xf32> to vector<1x16x240xf32>
    %141 = tpu.concatenate %140, %139 in 2 : vector<1x16x240xf32>, vector<1x16x16xf32> -> vector<1x16x256xf32>
    %cst_50 = arith.constant 0.000000e+00 : f32
    %142 = vector.broadcast %cst_50 : f32 to vector<1x16x16xf32>
    %143 = vector.extract_strided_slice %99 {offsets = [0, 0, 16], sizes = [1, 16, 240], strides = [1, 1, 1]} : vector<1x16x256xf32> to vector<1x16x240xf32>
    %144 = tpu.concatenate %143, %142 in 2 : vector<1x16x240xf32>, vector<1x16x16xf32> -> vector<1x16x256xf32>
    %cst_51 = arith.constant 0.000000e+00 : f32
    %145 = vector.broadcast %cst_51 : f32 to vector<1x16x32xf32>
    %146 = vector.extract_strided_slice %72 {offsets = [0, 0, 32], sizes = [1, 16, 224], strides = [1, 1, 1]} : vector<1x16x256xf32> to vector<1x16x224xf32>
    %147 = tpu.concatenate %146, %145 in 2 : vector<1x16x224xf32>, vector<1x16x32xf32> -> vector<1x16x256xf32>
    %cst_52 = arith.constant 0.000000e+00 : f32
    %148 = vector.broadcast %cst_52 : f32 to vector<1x16x32xf32>
    %149 = vector.extract_strided_slice %81 {offsets = [0, 0, 32], sizes = [1, 16, 224], strides = [1, 1, 1]} : vector<1x16x256xf32> to vector<1x16x224xf32>
    %150 = tpu.concatenate %149, %148 in 2 : vector<1x16x224xf32>, vector<1x16x32xf32> -> vector<1x16x256xf32>
    %cst_53 = arith.constant 0.000000e+00 : f32
    %151 = vector.broadcast %cst_53 : f32 to vector<1x16x32xf32>
    %152 = vector.extract_strided_slice %31 {offsets = [0, 0, 32], sizes = [1, 16, 224], strides = [1, 1, 1]} : vector<1x16x256xf32> to vector<1x16x224xf32>
    %153 = tpu.concatenate %152, %151 in 2 : vector<1x16x224xf32>, vector<1x16x32xf32> -> vector<1x16x256xf32>
    %cst_54 = arith.constant 0.000000e+00 : f32
    %154 = vector.broadcast %cst_54 : f32 to vector<1x16x32xf32>
    %155 = vector.extract_strided_slice %90 {offsets = [0, 0, 32], sizes = [1, 16, 224], strides = [1, 1, 1]} : vector<1x16x256xf32> to vector<1x16x224xf32>
    %156 = tpu.concatenate %155, %154 in 2 : vector<1x16x224xf32>, vector<1x16x32xf32> -> vector<1x16x256xf32>
    %cst_55 = arith.constant 0.000000e+00 : f32
    %157 = vector.broadcast %cst_55 : f32 to vector<1x16x32xf32>
    %158 = vector.extract_strided_slice %99 {offsets = [0, 0, 32], sizes = [1, 16, 224], strides = [1, 1, 1]} : vector<1x16x256xf32> to vector<1x16x224xf32>
    %159 = tpu.concatenate %158, %157 in 2 : vector<1x16x224xf32>, vector<1x16x32xf32> -> vector<1x16x256xf32>
    %160 = tpu.concatenate %102, %105, %108, %111, %114, %117, %120, %123, %126, %129, %72, %81, %31, %90, %99, %132 in 1 : vector<1x16x256xf32>, vector<1x16x256xf32>, vector<1x16x256xf32>, vector<1x16x256xf32>, vector<1x16x256xf32>, vector<1x16x256xf32>, vector<1x16x256xf32>, vector<1x16x256xf32>, vector<1x16x256xf32>, vector<1x16x256xf32>, vector<1x16x256xf32>, vector<1x16x256xf32>, vector<1x16x256xf32>, vector<1x16x256xf32>, vector<1x16x256xf32>, vector<1x16x256xf32> -> vector<1x256x256xf32>
    %161 = tpu.concatenate %135, %138, %141, %144, %147, %150, %153, %156, %159 in 1 : vector<1x16x256xf32>, vector<1x16x256xf32>, vector<1x16x256xf32>, vector<1x16x256xf32>, vector<1x16x256xf32>, vector<1x16x256xf32>, vector<1x16x256xf32>, vector<1x16x256xf32>, vector<1x16x256xf32> -> vector<1x144x256xf32>
    %162 = tpu.concatenate %160, %161 in 1 : vector<1x256x256xf32>, vector<1x144x256xf32> -> vector<1x400x256xf32>
    %163 = vector.shape_cast %162 : vector<1x400x256xf32> to vector<400x256xf32>
    %cst_56 = arith.constant dense<0.000000e+00> : vector<48x256xf32>
    %164 = tpu.matmul %18, %163, %cst_56 {dimension_numbers = #tpu.dot_dimension_numbers<[1], [0], [0], [1], [0, 0, 1, 1], [], []>} : vector<48x400xf32>, vector<400x256xf32>, vector<48x256xf32> -> vector<48x256xf32>
    %165 = vector.broadcast %21 : vector<48x1xf32> to vector<48x256xf32>
    %166 = arith.addf %164, %165 : vector<48x256xf32>
    %167 = vector.extract_strided_slice %166 {offsets = [0, 0], sizes = [24, 256], strides = [1, 1]} : vector<48x256xf32> to vector<24x256xf32>
    %168 = vector.extract_strided_slice %166 {offsets = [24, 0], sizes = [24, 256], strides = [1, 1]} : vector<48x256xf32> to vector<24x256xf32>
    %169 = vector.shape_cast %167 : vector<24x256xf32> to vector<1x24x256xf32>
    %170 = vector.shape_cast %168 : vector<24x256xf32> to vector<1x24x256xf32>
    %cst_57 = arith.constant 0.000000e+00 : f32
    %171 = vector.broadcast %cst_57 : f32 to vector<1x24x1xf32>
    %172 = vector.extract_strided_slice %170 {offsets = [0, 0, 0], sizes = [1, 24, 255], strides = [1, 1, 1]} : vector<1x24x256xf32> to vector<1x24x255xf32>
    %173 = tpu.concatenate %171, %172 in 2 : vector<1x24x1xf32>, vector<1x24x255xf32> -> vector<1x24x256xf32>
    %c1_i32_58 = arith.constant 1 : i32
    %174 = vector.broadcast %c1_i32_58 : i32 to vector<1x1x256xi32>
    %175 = arith.cmpi sge, %16, %174 : vector<1x1x256xi32>
    %cst_59 = arith.constant 0.000000e+00 : f32
    %176 = vector.shape_cast %175 : vector<1x1x256xi1> to vector<1x1x256xi1>
    %177 = vector.broadcast %176 : vector<1x1x256xi1> to vector<1x24x256xi1>
    %178 = vector.broadcast %cst_59 : f32 to vector<1x24x256xf32>
    %179 = arith.select %177, %173, %178 : vector<1x24x256xi1>, vector<1x24x256xf32>
    %cst_60 = arith.constant 0.000000e+00 : f32
    %180 = vector.broadcast %cst_60 : f32 to vector<1x24x1xf32>
    %181 = vector.extract_strided_slice %170 {offsets = [0, 0, 1], sizes = [1, 24, 255], strides = [1, 1, 1]} : vector<1x24x256xf32> to vector<1x24x255xf32>
    %182 = tpu.concatenate %181, %180 in 2 : vector<1x24x255xf32>, vector<1x24x1xf32> -> vector<1x24x256xf32>
    %c15_i32_61 = arith.constant 15 : i32
    %183 = vector.broadcast %c15_i32_61 : i32 to vector<1x1x256xi32>
    %184 = arith.cmpi slt, %16, %183 : vector<1x1x256xi32>
    %cst_62 = arith.constant 0.000000e+00 : f32
    %185 = vector.shape_cast %184 : vector<1x1x256xi1> to vector<1x1x256xi1>
    %186 = vector.broadcast %185 : vector<1x1x256xi1> to vector<1x24x256xi1>
    %187 = vector.broadcast %cst_62 : f32 to vector<1x24x256xf32>
    %188 = arith.select %186, %182, %187 : vector<1x24x256xi1>, vector<1x24x256xf32>
    %cst_63 = arith.constant 0.000000e+00 : f32
    %189 = vector.broadcast %cst_63 : f32 to vector<1x24x16xf32>
    %190 = vector.extract_strided_slice %179 {offsets = [0, 0, 0], sizes = [1, 24, 240], strides = [1, 1, 1]} : vector<1x24x256xf32> to vector<1x24x240xf32>
    %191 = tpu.concatenate %189, %190 in 2 : vector<1x24x16xf32>, vector<1x24x240xf32> -> vector<1x24x256xf32>
    %cst_64 = arith.constant 0.000000e+00 : f32
    %192 = vector.broadcast %cst_64 : f32 to vector<1x24x16xf32>
    %193 = vector.extract_strided_slice %170 {offsets = [0, 0, 0], sizes = [1, 24, 240], strides = [1, 1, 1]} : vector<1x24x256xf32> to vector<1x24x240xf32>
    %194 = tpu.concatenate %192, %193 in 2 : vector<1x24x16xf32>, vector<1x24x240xf32> -> vector<1x24x256xf32>
    %cst_65 = arith.constant 0.000000e+00 : f32
    %195 = vector.broadcast %cst_65 : f32 to vector<1x24x16xf32>
    %196 = vector.extract_strided_slice %188 {offsets = [0, 0, 0], sizes = [1, 24, 240], strides = [1, 1, 1]} : vector<1x24x256xf32> to vector<1x24x240xf32>
    %197 = tpu.concatenate %195, %196 in 2 : vector<1x24x16xf32>, vector<1x24x240xf32> -> vector<1x24x256xf32>
    %cst_66 = arith.constant 0.000000e+00 : f32
    %198 = vector.broadcast %cst_66 : f32 to vector<1x24x16xf32>
    %199 = vector.extract_strided_slice %179 {offsets = [0, 0, 16], sizes = [1, 24, 240], strides = [1, 1, 1]} : vector<1x24x256xf32> to vector<1x24x240xf32>
    %200 = tpu.concatenate %199, %198 in 2 : vector<1x24x240xf32>, vector<1x24x16xf32> -> vector<1x24x256xf32>
    %cst_67 = arith.constant 0.000000e+00 : f32
    %201 = vector.broadcast %cst_67 : f32 to vector<1x24x16xf32>
    %202 = vector.extract_strided_slice %170 {offsets = [0, 0, 16], sizes = [1, 24, 240], strides = [1, 1, 1]} : vector<1x24x256xf32> to vector<1x24x240xf32>
    %203 = tpu.concatenate %202, %201 in 2 : vector<1x24x240xf32>, vector<1x24x16xf32> -> vector<1x24x256xf32>
    %cst_68 = arith.constant 0.000000e+00 : f32
    %204 = vector.broadcast %cst_68 : f32 to vector<1x24x16xf32>
    %205 = vector.extract_strided_slice %188 {offsets = [0, 0, 16], sizes = [1, 24, 240], strides = [1, 1, 1]} : vector<1x24x256xf32> to vector<1x24x240xf32>
    %206 = tpu.concatenate %205, %204 in 2 : vector<1x24x240xf32>, vector<1x24x16xf32> -> vector<1x24x256xf32>
    %207 = tpu.concatenate %191, %194, %197, %179, %170, %188, %200, %203, %206 in 1 : vector<1x24x256xf32>, vector<1x24x256xf32>, vector<1x24x256xf32>, vector<1x24x256xf32>, vector<1x24x256xf32>, vector<1x24x256xf32>, vector<1x24x256xf32>, vector<1x24x256xf32>, vector<1x24x256xf32> -> vector<1x216x256xf32>
    %208 = vector.shape_cast %207 : vector<1x216x256xf32> to vector<216x256xf32>
    %cst_69 = arith.constant dense<0.000000e+00> : vector<24x256xf32>
    %209 = tpu.matmul %19, %208, %cst_69 {dimension_numbers = #tpu.dot_dimension_numbers<[1], [0], [0], [1], [0, 0, 1, 1], [], []>} : vector<24x216xf32>, vector<216x256xf32>, vector<24x256xf32> -> vector<24x256xf32>
    %210 = vector.broadcast %22 : vector<24x1xf32> to vector<24x256xf32>
    %211 = arith.addf %209, %210 : vector<24x256xf32>
    %212 = vector.shape_cast %211 : vector<24x256xf32> to vector<1x24x256xf32>
    %213 = tpu.concatenate %31, %169, %212, %63 in 1 : vector<1x16x256xf32>, vector<1x24x256xf32>, vector<1x24x256xf32>, vector<1x24x256xf32> -> vector<1x88x256xf32>
    %c0_70 = arith.constant 0 : index
    %c0_71 = arith.constant 0 : index
    %c0_72 = arith.constant 0 : index
    %214 = vector.load %arg9[%c0_70, %c0_71, %c0_72] : memref<1x88x256xf32, #tpu.memory_space<vmem>>, vector<1x88x256xf32>
    tpu.vector_store %arg9[%c0_70, %c0_71, %c0_72], %213 {strides = array<i32>} : memref<1x88x256xf32, #tpu.memory_space<vmem>>, vector<1x88x256xf32>,
    return
  }
  func.func @transform_0(%arg0: i32) -> (i32, i32, i32) {
    %c0_i32 = arith.constant 0 : i32
    %c0_i32_0 = arith.constant 0 : i32
    %c0_i32_1 = arith.constant 0 : i32
    return %arg0, %c0_i32, %c0_i32_0 : i32, i32, i32
  }
  func.func @transform_1(%arg0: i32) -> (i32, i32) {
    %c0_i32 = arith.constant 0 : i32
    %c0_i32_0 = arith.constant 0 : i32
    %c0_i32_1 = arith.constant 0 : i32
    return %c0_i32, %c0_i32_0 : i32, i32
  }
  func.func @transform_2(%arg0: i32) -> (i32, i32) {
    %c0_i32 = arith.constant 0 : i32
    %c0_i32_0 = arith.constant 0 : i32
    %c0_i32_1 = arith.constant 0 : i32
    return %c0_i32, %c0_i32_0 : i32, i32
  }
  func.func @transform_3(%arg0: i32) -> (i32, i32) {
    %c0_i32 = arith.constant 0 : i32
    %c0_i32_0 = arith.constant 0 : i32
    %c0_i32_1 = arith.constant 0 : i32
    return %c0_i32, %c0_i32_0 : i32, i32
  }
  func.func @transform_4(%arg0: i32) -> (i32, i32) {
    %c0_i32 = arith.constant 0 : i32
    %c0_i32_0 = arith.constant 0 : i32
    %c0_i32_1 = arith.constant 0 : i32
    return %c0_i32, %c0_i32_0 : i32, i32
  }
  func.func @transform_5(%arg0: i32) -> (i32, i32) {
    %c0_i32 = arith.constant 0 : i32
    %c0_i32_0 = arith.constant 0 : i32
    %c0_i32_1 = arith.constant 0 : i32
    return %c0_i32, %c0_i32_0 : i32, i32
  }
  func.func @transform_6(%arg0: i32) -> (i32, i32) {
    %c0_i32 = arith.constant 0 : i32
    %c0_i32_0 = arith.constant 0 : i32
    %c0_i32_1 = arith.constant 0 : i32
    return %c0_i32, %c0_i32_0 : i32, i32
  }
  func.func @transform_7(%arg0: i32) -> (i32, i32) {
    %c0_i32 = arith.constant 0 : i32
    %c0_i32_0 = arith.constant 0 : i32
    %c0_i32_1 = arith.constant 0 : i32
    return %c0_i32, %c0_i32_0 : i32, i32
  }
  func.func @transform_8(%arg0: i32) -> (i32, i32, i32) {
    %c0_i32 = arith.constant 0 : i32
    %c0_i32_0 = arith.constant 0 : i32
    %c0_i32_1 = arith.constant 0 : i32
    return %arg0, %c0_i32, %c0_i32_0 : i32, i32, i32
  }
}

</mosaic_0001>

<bundles_post_ra>
// kernel: inception_a.1
= control target key start
LH: loop header
LB: loop body
LE: loop exit
PB: predicated region body
PF: predicated region fallthrough
CT: control target
= control target key end

     0   :  { %s2256_s27 = smov 0   ;;  %s3693_s0 = inlined_call_operand.vmem [shape: f32[2,4,256], index: 0, kind: input, shape index: {}]   ;;  %s3694_s1 = inlined_call_operand.vmem [shape: f32[40,4], index: 1, kind: input, shape index: {}]   ;;  %s3695_s2 = inlined_call_operand.vmem [shape: f32[16,1], index: 2, kind: input, shape index: {}]   ;;  %s3696_s3 = inlined_call_operand.vmem [shape: f32[24,1], index: 3, kind: input, shape index: {}]   ;;  %s3697_s4 = inlined_call_operand.vmem [shape: f32[48,400], index: 4, kind: input, shape index: {}]   ;;  %s3698_s5 = inlined_call_operand.vmem [shape: f32[48,1], index: 5, kind: input, shape index: {}]   ;;  %s3699_s6 = inlined_call_operand.vmem [shape: f32[24,216], index: 6, kind: input, shape index: {}]   ;;  %s3700_s7 = inlined_call_operand.vmem [shape: f32[24,1], index: 7, kind: input, shape index: {}]   ;;  %s3701_s8 = inlined_call_operand.vmem [shape: f32[2,88,256], index: 8, kind: output, shape index: {}]  }
   0x1 LB: > { %s1859_s28 = sadd.s32 4294967295, %s2200_s27   ;;  %p1863_p0 = scmp.ge.s32.totalorder %s2200_s27, 1  ;;  %s2200_s27 = sphi %s2256_s27, %s18_s27  }
   0x2   : > { %p262_p1 = scmp.lt.s32.totalorder %s2200_s27, 3 }
   0x4   : > { %p263_p2 = pnand %p1863_p0, %p262_p1 }
   0x6   : > { %266 = sbr.rel (%p263_p2) target bundleno = 1180 (0x49c), region = 52 }
   0xb   : > { %v369_v0 = vld [vmem:[%s3695_s2 + $0x8] sm:$0xff]  ;;  %p296_p3 = scmp.lt.s32.totalorder %s1859_s28, 1  ;;  %v2202_v1 = vmov 0   ;;  %v368_v3 = vld [vmem:[%s3695_s2] sm:$0xff]  ;;  %vm403_vm0 = vcmask 1043456   ;;  %vm387_vm1 = vcmask 31744   ;;  %v306_v19 = vlaneseq }
   0xc   : > { %2051 = vset.pattern.permute.xlu0 %v2202_v1  ;;  %2152 = vset.pattern.permute.xlu1 %v2202_v1  ;;  %v333_v4 = vld [vmem:[%s3694_s1] sm:$0xff]  ;;  %v334_v5 = vld [vmem:[%s3694_s1 + $0x8] sm:$0xff]  ;;  %s2203_s23 = smov 1   ;;  %s2204_s24 = smov 2   ;;  %vm679_vm2 = vcmask 15360   ;;  %vm504_vm5 = vcmask 7168  }
   0xd   : > { %479 = vperm.xlu0 %2051, %v369_v0   ;;  %s3745_s28 = smov (!%p296_p3, %s1859_s28), 1  ;;  %2153 = vset.pattern.permute.xlu2 %v2202_v1  ;;  %s2205_s25 = smov 127   ;;  %v307_v20 = vand.u32 127, %v306_v19  ;;  %vm547_vm7 = vcmask 1039360   ;;  %vm746_vm10 = vcmask 1031168   ;;  %vm596_vm13 = vcmask 130048  }
   0xe   : > { %s2014_s9 = sshll.u32 %s3745_s28, 3  ;;  %s2033_s19 = smul.u32 176, %s3745_s28  ;;  %vm2467_vm14 = vmneg %vm596_vm13  ;;  %v3720_v1 = vmov 0  ;;  %v337_v19 = vld [vmem:[%s3694_s1 + $0x20] sm:$0xff] }
   0xf   : > { %s300_s12 = scalar_lea.vmem %s3693_s0, %s2014_s9  ;;  %s2206_s26 = smov 126   ;;  %v2350_v21 = vand.u32 15, %v307_v20  ;;  %v308_v22 = vadd.s32 128, %v307_v20  ;;  %v3721_v1 = vsel %vm2467_vm14, 4294967295, %v3720_v1 }
  0x10   : > { %v382_v2 = vld [vmem:[%s300_s12] sm:$0xff]  ;;  %s2286_s22 = scalar_lea.vmem %s3701_s8, %s2033_s19  ;;  %s2207_s28 = smov 16   ;;  %3722 = vst [vmem:[#allocation4_spill] sm:$0xff] %v3721_v1 }
  0x11   : > { %384 = vst [vmem:[#allocation1] ss:$2 sm:$0xff] %v382_v2  ;;  %s2208_s29 = smov 96   ;;  %s2209_s30 = smov 32   ;;  %vm688_vm3 = vcmp.ge.s32.totalorder %v2350_v21, 2  ;;  %v2363_v26 = vand.u32 15, %v308_v22 }
  0x12   : > { %3718 = vst [vmem:[#allocation2_spill] sm:$0xff] %v2350_v21  ;;  %s2210_s9 = smov 112   ;;  %vm517_vm6 = vcmp.ge.s32.totalorder %v2350_v21, 1  ;;  %vm560_vm8 = vcmp.lt.s32.totalorder %v2350_v21, 15  ;;  %vm755_vm9 = vcmp.lt.s32.totalorder %v2350_v21, 14  ;;  %v2957_v1 = vld [vmem:[%s3697_s4 + $0x80] sm:$0xff] }
  0x13   : > { %3719 = vst [vmem:[#allocation3_spill] sm:$0xff] %v2363_v26  ;;  %vm689_vm4 = vcmp.ge.s32.totalorder %v2363_v26, 2  ;;  %vm756_vm11 = vcmp.lt.s32.totalorder %v2363_v26, 14  ;;  %vm561_vm12 = vcmp.lt.s32.totalorder %v2363_v26, 15  ;;  %vm518_vm15 = vcmp.ge.s32.totalorder %v2363_v26, 1 }
  0x15   : > { %474 = vperm.xlu0 %2051, %v368_v3  }
  0x18   : > { %v385_v6 = vld.sshfl [vmem:[#allocation1] sm:$0xff pattern:$0x75316420]  ;;  %v386_v7 = vld.sshfl [vmem:[#allocation1 + $0x8] sm:$0xff pattern:$0x75316420] }
  0x19   : > { %1867 = vmatpush.msk.msra.mxu0 %vm403_vm0, %v385_v6  ;;  %1873 = vmatpush.msk.msra.mxu1 %vm403_vm0, %v386_v7 }
  0x1a   : > { %2016 = vmatpush.msk.msra.mxu3 %vm403_vm0, %v386_v7  ;;  %1868 = vmatmul.msk.f32.vlgmr.msra.gmra.mxu0 %vm387_vm1, %v333_v4 }
  0x1b   : > { %1874 = vmatmul.msk.f32.vlgmr.msra.gmra.mxu1 %vm387_vm1, %v333_v4  ;;  %1875 = vmatmul.msk.f32.vlgmr.msra.gmra.mxu3 %vm387_vm1, %v334_v5 }
  0x1c   : > { %2015 = vmatpush.msk.msra.mxu2 %vm403_vm0, %v385_v6  ;;  %vm627_vm0 = vcmask 916480  }
  0x1d   : > { %1872 = vmatmul.msk.f32.vlgmr.msra.gmra.mxu2 %vm387_vm1, %v337_v19 }
  0x22   : > { %1869 = vmatmul.msk.f32.gmra.mxu0 %vm387_vm1, %v334_v5 }
  0x7f   : > { %v480_v8 = vpop.permute.xlu0 %479 }
  0x87   : > { %v475_v9 = vpop.permute.xlu0 %474 }
  0x97   : > { %v425_v10 = vpop.f32.mrf.mxu0 }
  0x98   : > { %v2288_v11 = vadd.f32 %v475_v9, %v425_v10  ;;  %v457_v12 = vpop.f32.mrf.mxu1 }
  0x99   : > { %v2290_v13 = vadd.f32 %v475_v9, %v457_v12 }
  0x9a   : > { %1782 = vst [vmem:[%s2286_s22] sm:$0xff] %v2288_v11  ;;  %698 = vrot.lane.b32.xlu1 %v2288_v11, %s2203_s23  ;;  %671 = vrot.lane.b32.xlu2 %v2288_v11, %s2204_s24 }
  0x9b   : > { %1783 = vst [vmem:[%s2286_s22 + $0x8] sm:$0xff] %v2290_v13  ;;  %720 = vrot.lane.b32.xlu0 %v2290_v13, %s2205_s25 }
  0x9e   : > { %v460_v14 = vpop.f32.mrf.mxu3 }
  0x9f   : > { %v2302_v15 = vadd.f32 %v480_v8, %v460_v14  ;;  %v428_v16 = vpop.f32.mrf.mxu0  ;;  %v335_v14 = vld [vmem:[%s3694_s1 + $0x10] sm:$0xff] }
  0xa0   : > { %v2304_v17 = vadd.f32 %v480_v8, %v428_v16  ;;  %1876 = vmatmul.msk.f32.gmra.mxu3 %vm387_vm1, %v335_v14  ;;  %1870 = vmatmul.msk.f32.gmra.mxu0 %vm387_vm1, %v335_v14 }
  0xa1   : > { %1785 = vst [vmem:[%s2286_s22 + $0x18] sm:$0xff] %v2302_v15 }
  0xa2   : > { %1784 = vst [vmem:[%s2286_s22 + $0x10] sm:$0xff] %v2304_v17  ;;  %738 = vrot.lane.b32.xlu1 %v2288_v11, %s2206_s26  ;;  %673 = vrot.lane.b32.xlu2 %v2290_v13, %s2204_s24  ;;  %v2344_v18 = vpack.i.bf16 %v2288_v11, %v2304_v17 }
  0xa3   : > { %894 = vrot.lane.b32.xlu0 %v2288_v11, %s2207_s28 }
  0xaa   : > { %1057 = vrot.lane.b32.xlu1 %v2290_v13, %s2208_s29  ;;  %740 = vrot.lane.b32.xlu2 %v2290_v13, %s2206_s26 }
  0xab   : > { %744 = vrot.lane.b32.xlu0 %v2302_v15, %s2206_s26 }
  0xb2   : > { %677 = vrot.lane.b32.xlu1 %v2302_v15, %s2204_s24  ;;  %718 = vrot.lane.b32.xlu2 %v2288_v11, %s2205_s25 }
  0xb3   : > { %1061 = vrot.lane.b32.xlu0 %v2302_v15, %s2208_s29 }
  0xba   : > { %724 = vrot.lane.b32.xlu1 %v2302_v15, %s2205_s25  ;;  %700 = vrot.lane.b32.xlu2 %v2290_v13, %s2203_s23 }
  0xbb   : > { %702 = vrot.lane.b32.xlu0 %v2304_v17, %s2203_s23 }
  0xc2   : > { %704 = vrot.lane.b32.xlu1 %v2302_v15, %s2203_s23  ;;  %806 = vrot.lane.b32.xlu2 %v2288_v11, %s2209_s30 }
  0xc3   : > { %722 = vrot.lane.b32.xlu0 %v2304_v17, %s2205_s25 }
  0xca   : > { %742 = vrot.lane.b32.xlu2 %v2304_v17, %s2206_s26  ;;  %675 = vrot.lane.b32.xlu1 %v2304_v17, %s2204_s24 }
  0xcb   : > { %898 = vrot.lane.b32.xlu0 %v2304_v17, %s2207_s28 }
  0xd2   : > { %2053 = vrot.lane.b32.xlu2 %v2344_v18, %s2208_s29  ;;  %810 = vrot.lane.b32.xlu1 %v2304_v17, %s2209_s30 }
  0xf4   : > { %v672_v23 = vpop.permute.xlu2 %671 }
  0xf5   : > { %v2354_v24 = vsel %vm679_vm2, 0.0, %v672_v23 }
  0xf6   : > { %v2359_v25 = vsel %vm688_vm3, %v2354_v24, 0.0 }
  0xf7   : > { %862 = vrot.lane.b32.xlu2 %v2359_v25, %s2207_s28 }
  0xfc   : > { %v674_v27 = vpop.permute.xlu2 %673 }
  0xfd   : > { %v2367_v28 = vsel %vm679_vm2, %v672_v23, %v674_v27  ;;  %v336_v23 = vld [vmem:[%s3694_s1 + $0x18] sm:$0xff] }
  0xfe   : > { %v2372_v29 = vsel %vm689_vm4, %v2367_v28, 0.0  ;;  %1877 = vmatmul.msk.f32.gmra.mxu3 %vm387_vm1, %v336_v23  ;;  %1871 = vmatmul.msk.f32.gmra.mxu0 %vm387_vm1, %v336_v23 }
  0xff   : > { %944 = vrot.lane.b32.xlu1 %v2372_v29, %s2210_s9 }
 0x104   : > { %v741_v30 = vpop.permute.xlu2 %740 }
 0x105   : > { %v2410_v42 = vsel %vm746_vm10, %v741_v30, 0.0 }
 0x106   : > { %v762_v45 = vsel %vm756_vm11, %v2410_v42, 0.0  ;;  %1878 = vmatmul.msk.f32.gmra.mxu3 %vm387_vm1, %v337_v19  ;;  %vm777_vm1 = vcmask 261120  }
 0x10c   : > { %v2377_v31 = vpop.permute.xlu1 %698  ;;  %v719_v35 = vpop.permute.xlu2 %718 }
 0x10d   : > { %v721_v32 = vpop.permute.xlu0 %720  ;;  %v2381_v33 = vsel %vm504_vm5, 0.0, %v2377_v31 }
 0x10e   : > { %v714_v34 = vsel %vm517_vm6, %v2381_v33, 0.0  ;;  %v2389_v36 = vsel %vm547_vm7, %v719_v35, %v721_v32  ;;  %v2429_v49 = vsel %vm547_vm7, %v721_v32, 0.0  ;;  %v2062_v32 = vpack.i.bf16 %v2290_v13, %v2302_v15 }
 0x10f   : > { %878 = vrot.lane.b32.xlu0 %v714_v34, %s2207_s28  ;;  %v2400_v40 = vsel %vm560_vm8, %v2389_v36, 0.0  ;;  %v735_v52 = vsel %vm561_vm12, %v2429_v49, 0.0 }
 0x114   : > { %v739_v37 = vpop.permute.xlu1 %738  ;;  %v701_v53 = vpop.permute.xlu2 %700 }
 0x115   : > { %v2392_v38 = vpop.permute.xlu0 %894  ;;  %v2395_v39 = vsel %vm746_vm10, %v739_v37, %v741_v30  ;;  %v2519_v20 = vsel %vm504_vm5, %v2377_v31, %v701_v53 }
 0x116   : > { %v761_v41 = vsel %vm755_vm9, %v2395_v39, 0.0  ;;  %v715_v22 = vsel %vm518_vm15, %v2519_v20, 0.0 }
 0x117   : > { %826 = vrot.lane.b32.xlu0 %v2400_v40, %s2209_s30  ;;  %846 = vrot.lane.b32.xlu1 %v761_v41, %s2209_s30 }
 0x11c   : > { %v2412_v43 = vpop.permute.xlu1 %1057  ;;  %v2461_v0 = vpop.permute.xlu2 %806 }
 0x11d   : > { %v745_v44 = vpop.permute.xlu0 %744 }
 0x11e   : > { %v2418_v46 = vsel %vm746_vm10, %v745_v44, 0.0 }
 0x11f   : > { %v764_v47 = vsel %vm756_vm11, %v2418_v46, 0.0  ;;  %1089 = vrot.lane.b32.xlu0 %v762_v45, %s2208_s29  ;;  %790 = vrot.lane.b32.xlu1 %v714_v34, %s2209_s30 }
 0x120   : > { %v2425_v48 = vpack.i.bf16 %v762_v45, %v764_v47 }
 0x124   : > { %v678_v50 = vpop.permute.xlu1 %677  ;;  %v743_v7 = vpop.permute.xlu2 %742 }
 0x125   : > { %v2431_v51 = vpop.permute.xlu0 %1061  ;;  %v2495_v9 = vsel %vm746_vm10, %v743_v7, %v745_v44  ;;  %vm2661_vm10 = vmneg %vm777_vm1 }
 0x126   : > { %v763_v12 = vsel %vm755_vm9, %v2495_v9, 0.0 }
 0x127   : > { %1073 = vrot.lane.b32.xlu0 %v735_v52, %s2208_s29  ;;  %926 = vrot.lane.b32.xlu1 %v761_v41, %s2207_s28  ;;  %v2077_v16 = vpack.i.bf16 %v761_v41, %v763_v12 }
 0x12c   : > { %v725_v54 = vpop.permute.xlu1 %724  ;;  %v2585_v44 = vpop.permute.xlu2 %2053 }
 0x12d   : > { %v2439_v55 = vsel %vm547_vm7, %v725_v54, 0.0  ;;  %v703_v56 = vpop.permute.xlu0 %702 }
 0x12e   : > { %v2444_v57 = vsel %vm561_vm12, %v2439_v55, 0.0  ;;  %v2447_v58 = vsel %vm504_vm5, 0.0, %v703_v56 }
 0x12f   : > { %v716_v59 = vsel %vm517_vm6, %v2447_v58, 0.0  ;;  %1077 = vrot.lane.b32.xlu0 %v2444_v57, %s2208_s29  ;;  %769 = vrot.lane.b32.xlu1 %v2359_v25, %s2209_s30  ;;  %v2457_v60 = vpack.i.bf16 %v735_v52, %v2444_v57 }
 0x130   : > { %v2459_v61 = vpack.i.bf16 %v714_v34, %v716_v59 }
 0x134   : > { %v705_v62 = vpop.permute.xlu1 %704 }
 0x135   : > { %v723_v63 = vpop.permute.xlu0 %722 }
 0x136   : > { %v2537_v27 = vsel %vm547_vm7, %v723_v63, %v725_v54 }
 0x137   : > { %1012 = vrot.lane.b32.xlu0 %v764_v47, %s2210_s9  ;;  %910 = vrot.lane.b32.xlu1 %v2400_v40, %s2207_s28  ;;  %v736_v31 = vsel %vm560_vm8, %v2537_v27, 0.0 }
 0x138   : > { %v2102_v34 = vpack.i.bf16 %v2400_v40, %v736_v31 }
 0x13c   : > { %v676_v2 = vpop.permute.xlu1 %675 }
 0x13d   : > { %v2471_v3 = vpop.permute.xlu0 %898  ;;  %v2474_v4 = vsel %vm679_vm2, %v676_v2, %v678_v50  ;;  %v2483_v6 = vsel %vm679_vm2, 0.0, %v676_v2  ;;  %vm1030_vm2 = vcmask 785408  }
 0x13e   : > { %v697_v5 = vsel %vm689_vm4, %v2474_v4, 0.0  ;;  %1880 = vmatpush.msk.msrb.mxu2 %vm2467_vm14, %v2471_v3  ;;  %v696_v8 = vsel %vm688_vm3, %v2483_v6, 0.0 }
 0x13f   : > { %992 = vrot.lane.b32.xlu0 %v735_v52, %s2210_s9  ;;  %1093 = vrot.lane.b32.xlu1 %v764_v47, %s2208_s29  ;;  %v2057_v10 = vpack.i.bf16 %v2359_v25, %v696_v8  ;;  %v2534_v25 = vsel %vm504_vm5, %v703_v56, %v705_v62  ;;  %v2112_v35 = vpack.i.bf16 %v2372_v29, %v697_v5  ;;  %v375_v52 = vld [vmem:[%s3698_s5 + $0x28] sm:$0xff] }
 0x140   : > { %1882 = vmatpush.msk.msrb.mxu2 %vm2467_vm14, %v2392_v38  ;;  %948 = vrot.lane.b32.xlu2 %v697_v5, %s2210_s9  ;;  %v717_v30 = vsel %vm518_vm15, %v2534_v25, 0.0 }
 0x141   : > { %v2107_v56 = vpack.i.bf16 %v715_v22, %v717_v30 }
 0x144   : > { %v2565_v37 = vpop.permute.xlu1 %810 }
 0x147   : > { %850 = vrot.lane.b32.xlu0 %v763_v12, %s2209_s30  ;;  %2058 = vrot.lane.b32.xlu1 %v2057_v10, %s2210_s9 }
 0x148   : > { %882 = vrot.lane.b32.xlu2 %v716_v59, %s2207_s28 }
 0x14f   : > { %2078 = vrot.lane.b32.xlu0 %v2077_v16, %s2208_s29  ;;  %866 = vrot.lane.b32.xlu1 %v696_v8, %s2207_s28 }
 0x150   : > { %1008 = vrot.lane.b32.xlu2 %v762_v45, %s2210_s9 }
 0x151   : > { %v2595_v50 = vpop.permute.xlu2 %862 }
 0x157   : > { %773 = vrot.lane.b32.xlu0 %v696_v8, %s2209_s30  ;;  %1041 = vrot.lane.b32.xlu1 %v715_v22, %s2208_s29 }
 0x158   : > { %980 = vrot.lane.b32.xlu2 %v2302_v15, %s2210_s9 }
 0x15f   : > { %1045 = vrot.lane.b32.xlu0 %v717_v30, %s2208_s29  ;;  %1024 = vrot.lane.b32.xlu1 %v2372_v29, %s2208_s29 }
 0x160   : > { %830 = vrot.lane.b32.xlu2 %v736_v31, %s2209_s30 }
 0x167   : > { %2063 = vrot.lane.b32.xlu1 %v2062_v32, %s2207_s28  ;;  %1028 = vrot.lane.b32.xlu0 %v697_v5, %s2208_s29 }
 0x168   : > { %794 = vrot.lane.b32.xlu2 %v716_v59, %s2209_s30 }
 0x16f   : > { %996 = vrot.lane.b32.xlu1 %v2444_v57, %s2210_s9  ;;  %2103 = vrot.lane.b32.xlu0 %v2102_v34, %s2210_s9 }
 0x170   : > { %930 = vrot.lane.b32.xlu2 %v763_v12, %s2207_s28 }
 0x171   : > { %v2571_v40 = vpop.permute.xlu1 %944 }
 0x177   : > { %2068 = vrot.lane.b32.xlu1 %v2344_v18, %s2210_s9  ;;  %2113 = vrot.lane.b32.xlu0 %v2112_v35, %s2207_s28 }
 0x178   : > { %2083 = vrot.lane.b32.xlu2 %v2102_v34, %s2208_s29 }
 0x17f   : > { %976 = vrot.lane.b32.xlu1 %v2290_v13, %s2210_s9  ;;  %964 = vrot.lane.b32.xlu0 %v717_v30, %s2210_s9 }
 0x180   : > { %914 = vrot.lane.b32.xlu2 %v736_v31, %s2207_s28 }
 0x181   : > { %v2573_v41 = vpop.permute.xlu0 %878 }
 0x187   : > { %2073 = vrot.lane.b32.xlu1 %v2425_v48, %s2209_s30  ;;  %2123 = vrot.lane.b32.xlu0 %v2457_v60, %s2209_s30 }
 0x188   : > { %2088 = vrot.lane.b32.xlu2 %v2459_v61, %s2208_s29 }
 0x189   : > { %v2581_v18 = vpop.permute.xlu0 %826  ;;  %v2583_v29 = vpop.permute.xlu1 %846 }
 0x18f   : > { %2128 = vrot.lane.b32.xlu1 %v2062_v32, %s2209_s30  ;;  %2133 = vrot.lane.b32.xlu0 %v2425_v48, %s2207_s28 }
 0x190   : > { %2093 = vrot.lane.b32.xlu2 %v2057_v10, %s2208_s29 }
 0x191   : > { %v2591_v45 = vpop.permute.xlu0 %1089  ;;  %v2593_v47 = vpop.permute.xlu1 %790 }
 0x197   : > { %2143 = vrot.lane.b32.xlu1 %v2112_v35, %s2209_s30  ;;  %1130 = vperm.xlu0 %2051, %v375_v52   ;;  %v374_v52 = vld [vmem:[%s3698_s5 + $0x20] sm:$0xff] }
 0x198   : > { %2098 = vrot.lane.b32.xlu2 %v2077_v16, %s2210_s9 }
 0x199   : > { %v2602_v53 = vpop.permute.xlu0 %1073  ;;  %v2604_v48 = vpop.permute.xlu1 %926 }
 0x19a   : > { %v2606_v54 = vpop.permute.xlu2 %948 }
 0x19f   : > { %1125 = vperm.xlu1 %2152, %v374_v52  }
 0x1a0   : > { %2108 = vrot.lane.b32.xlu2 %v2107_v56, %s2207_s28 }
 0x1a1   : > { %v2609_v57 = vpop.permute.xlu0 %1077  ;;  %v2611_v59 = vpop.permute.xlu1 %769 }
 0x1a2   : > { %v2613_v62 = vpop.permute.xlu2 %882 }
 0x1a3   : > { %1884 = vmatpush.msk.msrb.mxu2 %vm2467_vm14, %v2613_v62 }
 0x1a5   : > { %1886 = vmatpush.msk.msrb.mxu2 %vm2467_vm14, %v2573_v41 }
 0x1a8   : > { %2118 = vrot.lane.b32.xlu2 %v2459_v61, %s2210_s9 }
 0x1a9   : > { %v2623_v63 = vpop.permute.xlu0 %1012  ;;  %v2625_v2 = vpop.permute.xlu1 %910 }
 0x1aa   : > { %v2627_v5 = vpop.permute.xlu2 %1008 }
 0x1b0   : > { %960 = vrot.lane.b32.xlu2 %v715_v22, %s2210_s9 }
 0x1b1   : > { %v2630_v7 = vpop.permute.xlu0 %992  ;;  %v2632_v8 = vpop.permute.xlu1 %1093 }
 0x1b2   : > { %v2634_v10 = vpop.permute.xlu2 %980 }
 0x1b8   : > { %2138 = vrot.lane.b32.xlu2 %v2107_v56, %s2209_s30 }
 0x1b9   : > { %v2637_v12 = vpop.permute.xlu0 %850  ;;  %v2059_v14 = vpop.permute.xlu1 %2058 }
 0x1ba   : > { %v2639_v61 = vpop.permute.xlu2 %830  ;;  %v2061_v16 = vunpack.i.h.bf16 %v2059_v14  ;;  %v2060_v19 = vunpack.i.l.bf16 %v2059_v14 }
 0x1bc   : > { %v951_v23 = vsel %vm627_vm0, %v2060_v19, %v2606_v54  ;;  %v950_v22 = vsel %vm627_vm0, %v2061_v16, %v2571_v40 }
 0x1bd   : > { %1186 = vmatpush.msrb.mxu3 %v951_v23  ;;  %v2055_v23 = vunpack.i.l.bf16 %v2585_v44 }
 0x1bf   : > { %1187 = vmatpush.msrb.mxu3 %v950_v22  ;;  %v2771_v22 = vld [vmem:[%s3697_s4] sm:$0xff] }
 0x1c0   : > { %2148 = vrot.lane.b32.xlu2 %v2457_v60, %s2207_s28 }
 0x1c1   : > { %v2079_v30 = vpop.permute.xlu0 %2078  ;;  %v2647_v31 = vpop.permute.xlu1 %866  ;;  %1911 = vmatpush.msk.msrb.mxu3 %vm755_vm9, %v2495_v9 }
 0x1c2   : > { %v2081_v32 = vunpack.i.h.bf16 %v2079_v30  ;;  %v2080_v34 = vunpack.i.l.bf16 %v2079_v30  ;;  %v2652_v35 = vpop.permute.xlu2 %794  ;;  %1888 = vmatpush.msk.msrb.mxu2 %vm2467_vm14, %v2647_v31  ;;  %v2773_v30 = vpop.f32.mrf.mxu2 }
 0x1c3   : > { %1912 = vmatpush.msk.msrb.mxu3 %vm755_vm9, %v2395_v39  ;;  %3726 = vst [vmem:[#allocation6_spill] sm:$0xff] %v2773_v30 }
 0x1c4   : > { %1890 = vmatpush.msk.msrb.mxu2 %vm2467_vm14, %v2595_v50  ;;  %v1096_v9 = vsel %vm1030_vm2, %v2080_v34, %v2632_v8  ;;  %v1095_v39 = vsel %vm1030_vm2, %v2081_v32, %v2591_v45  ;;  %v2775_v32 = vpop.f32.mrf.mxu0  ;;  %v2056_v34 = vunpack.i.h.bf16 %v2585_v44  ;;  %v1064_v44 = vsel %vm1030_vm2, %v2055_v23, %v2431_v51  ;;  %v2807_v23 = vld [vmem:[%s3697_s4 + $0x8] sm:$0xff] }
 0x1c5   : > { %1913 = vmatpush.msk.msrb.mxu3 %vm560_vm8, %v2537_v27  ;;  %1270 = vmatpush.msrb.mxu1 %v1096_v9  ;;  %3727 = vst [vmem:[#allocation7_spill] sm:$0xff] %v2775_v32 }
 0x1c6   : > { %1892 = vmatpush.msk.msrb.mxu2 %vm2661_vm10, %v2637_v12  ;;  %492 = vrot.lane.b32.xlu0 %v2775_v32, %s2203_s23  ;;  %v1063_v60 = vsel %vm1030_vm2, %v2056_v34, %v2412_v43 }
 0x1c7   : > { %1914 = vmatpush.msk.msrb.mxu3 %vm560_vm8, %v2389_v36  ;;  %1271 = vmatpush.msrb.mxu1 %v1095_v39  ;;  %v2705_v36 = vld [vmem:[%s3697_s4 + $0x18] sm:$0xff] }
 0x1c8   : > { %1894 = vmatpush.msk.msrb.mxu2 %vm2661_vm10, %v2583_v29  ;;  %1927 = vmatmul.msk.f32.vlgmr.msrb.gmra.mxu1 %vm596_vm13, %v2705_v36 }
 0x1c9   : > { %2017 = vmatpush.msk.msra.mxu1 %vm1030_vm2, %v2609_v57  ;;  %v2689_v27 = vpop.permute.xlu0 %773  ;;  %v2691_v56 = vpop.permute.xlu1 %1041  ;;  %1192 = vmatpush.msrb.mxu3 %v2304_v17 }
 0x1ca   : > { %v2694_v14 = vpop.permute.xlu2 %930  ;;  %1896 = vmatpush.msk.msrb.mxu2 %vm2661_vm10, %v2639_v61 }
 0x1cb   : > { %2018 = vmatpush.msk.msra.mxu1 %vm1030_vm2, %v2602_v53  ;;  %1193 = vmatpush.msrb.mxu3 %v2288_v11  ;;  %v2722_v11 = vpop.f32.mrf.mxu3 }
 0x1cc   : > { %1898 = vmatpush.msk.msrb.mxu2 %vm2661_vm10, %v2581_v18  ;;  %3725 = vst [vmem:[#allocation5_spill] sm:$0xff] %v2722_v11  ;;  %494 = vrot.lane.b32.xlu1 %v2722_v11, %s2203_s23  ;;  %v2982_v26 = vpop.f32.mrf.mxu0 }
 0x1cd   : > { %2019 = vmatpush.msk.msra.mxu1 %vm1030_vm2, %v2431_v51  ;;  %1915 = vmatpush.msk.msrb.mxu3 %vm517_vm6, %v2447_v58  ;;  %3731 = vst [vmem:[#allocation11_spill] sm:$0xff] %v2982_v26 }
 0x1ce   : > { %1900 = vmatpush.msk.msrb.mxu2 %vm2661_vm10, %v2565_v37 }
 0x1cf   : > { %2020 = vmatpush.msk.msra.mxu1 %vm1030_vm2, %v2412_v43  ;;  %1916 = vmatpush.msk.msrb.mxu3 %vm517_vm6, %v2381_v33 }
 0x1d0   : > { %1902 = vmatpush.msk.msrb.mxu2 %vm2661_vm10, %v2461_v0 }
 0x1d1   : > { %v2730_v17 = vpop.permute.xlu0 %1045  ;;  %v2732_v58 = vpop.permute.xlu1 %1024  ;;  %1917 = vmatpush.msk.msrb.mxu3 %vm688_vm3, %v2483_v6  ;;  %v2750_v6 = vld [vmem:[%s3697_s4 + $0x38] sm:$0xff] }
 0x1d2   : > { %v2084_v16 = vpop.permute.xlu2 %2083  ;;  %1904 = vmatpush.msk.msrb.mxu2 %vm2661_vm10, %v2652_v35  ;;  %2021 = vmatpush.msk.msra.mxu1 %vm1030_vm2, %v2730_v17 }
 0x1d3   : > { %v2086_v33 = vunpack.i.h.bf16 %v2084_v16  ;;  %v2085_v19 = vunpack.i.l.bf16 %v2084_v16  ;;  %1918 = vmatpush.msk.msrb.mxu3 %vm688_vm3, %v2354_v24  ;;  %1928 = vmatmul.msk.f32.gmra.mxu1 %vm596_vm13, %v2750_v6  ;;  %vm1668_vm3 = vcmask 719872  }
 0x1d4   : > { %1906 = vmatpush.msk.msrb.mxu2 %vm2661_vm10, %v2593_v47  ;;  %2022 = vmatpush.msk.msra.mxu1 %vm1030_vm2, %v2691_v56 }
 0x1d5   : > { %1920 = vmatpush.msk.msrb.mxu3 %vm2467_vm14, %v2694_v14  ;;  %v1080_v24 = vsel %vm1030_vm2, %v2085_v19, %v2609_v57  ;;  %v1079_v9 = vsel %vm1030_vm2, %v2086_v33, %v2602_v53  ;;  %500 = vrot.lane.b32.xlu1 %v2773_v30, %s2203_s23 }
 0x1d6   : > { %1221 = vmatpush.msrb.mxu0 %v1080_v24  ;;  %1908 = vmatpush.msk.msrb.mxu2 %vm2661_vm10, %v2689_v27 }
 0x1d7   : > { %1922 = vmatpush.msk.msrb.mxu3 %vm2467_vm14, %v2604_v48 }
 0x1d8   : > { %1222 = vmatpush.msrb.mxu0 %v1079_v9  ;;  %1910 = vmatpush.msk.msrb.mxu2 %vm2661_vm10, %v2611_v59  ;;  %v2824_v9 = vld [vmem:[%s3697_s4 + $0x20] sm:$0xff] }
 0x1d9   : > { %v2788_v39 = vpop.permute.xlu0 %1028  ;;  %1167 = vmatmul.f32.vlgmr.msrb.gmra.mxu2 %v2771_v22  ;;  %v2064_v52 = vpop.permute.xlu1 %2063 }
 0x1da   : > { %v2795_v16 = vpop.permute.xlu2 %914  ;;  %1223 = vmatpush.msrb.mxu0 %v1064_v44  ;;  %v2066_v33 = vunpack.i.h.bf16 %v2064_v52  ;;  %v2065_v19 = vunpack.i.l.bf16 %v2064_v52  ;;  %2023 = vmatpush.msk.msra.mxu1 %vm1030_vm2, %v2788_v39  ;;  %v2835_v44 = vld [vmem:[%s3697_s4 + $0x58] sm:$0xff] }
 0x1db   : > { %1924 = vmatpush.msk.msrb.mxu3 %vm2467_vm14, %v2795_v16  ;;  %1929 = vmatmul.msk.f32.gmra.mxu1 %vm596_vm13, %v2835_v44 }
 0x1dc   : > { %1224 = vmatpush.msrb.mxu0 %v1063_v60  ;;  %2024 = vmatpush.msk.msra.mxu1 %vm1030_vm2, %v2732_v58  ;;  %v903_v24 = vsel %vm596_vm13, %v2471_v3, %v2065_v19  ;;  %v902_v34 = vsel %vm596_vm13, %v2392_v38, %v2066_v33  ;;  %v2828_v3 = vpop.f32.mrf.mxu3 }
 0x1dd   : > { %1926 = vmatpush.msk.msrb.mxu3 %vm2467_vm14, %v2625_v2  ;;  %1291 = vmatpush.msra.mxu2 %v903_v24  ;;  %3728 = vst [vmem:[#allocation8_spill] sm:$0xff] %v2828_v3  ;;  %v2883_v24 = vld [vmem:[%s3697_s4 + $0x78] sm:$0xff] }
 0x1de   : > { %1202 = vmatmul.f32.vlgmr.msrb.gmra.mxu3 %v2807_v23  ;;  %2025 = vmatpush.msk.msra.mxu1 %vm627_vm0, %v2623_v63 }
 0x1df   : > { %1933 = vmatpush.msk.msra.mxu3 %vm627_vm0, %v2606_v54  ;;  %1292 = vmatpush.msra.mxu2 %v902_v34 }
 0x1e0   : > { %2026 = vmatpush.msk.msra.mxu1 %vm627_vm0, %v2627_v5  ;;  %498 = vrot.lane.b32.xlu0 %v2828_v3, %s2203_s23 }
 0x1e1   : > { %1934 = vmatpush.msk.msra.mxu3 %vm627_vm0, %v2571_v40  ;;  %v2841_v38 = vpop.permute.xlu0 %2103  ;;  %1170 = vmatmul.f32.gmra.mxu2 %v2824_v9  ;;  %v2844_v54 = vpop.permute.xlu1 %996  ;;  %v2856_v40 = vld [vmem:[%s3697_s4 + $0x28] sm:$0xff] }
 0x1e2   : > { %v2089_v52 = vpop.permute.xlu2 %2088  ;;  %2027 = vmatpush.msk.msra.mxu1 %vm627_vm0, %v2844_v54  ;;  %537 = vrot.lane.b32.xlu1 %v2722_v11, %s2205_s25  ;;  %v2106_v11 = vunpack.i.h.bf16 %v2841_v38 }
 0x1e3   : > { %v2091_v33 = vunpack.i.h.bf16 %v2089_v52  ;;  %v2090_v19 = vunpack.i.l.bf16 %v2089_v52  ;;  %1935 = vmatpush.msk.msra.mxu3 %vm756_vm11, %v2418_v46  ;;  %v2871_v46 = vld [vmem:[%s3697_s4 + $0x40] sm:$0xff]  ;;  %1930 = vmatmul.msk.f32.gmra.mxu1 %vm596_vm13, %v2883_v24 }
 0x1e4   : > { %2028 = vmatpush.msk.msra.mxu1 %vm627_vm0, %v2630_v7 }
 0x1e5   : > { %1936 = vmatpush.msk.msra.mxu3 %vm756_vm11, %v2410_v42  ;;  %v1048_v60 = vsel %vm1030_vm2, %v2090_v19, %v2730_v17  ;;  %v1047_v42 = vsel %vm1030_vm2, %v2091_v33, %v2691_v56 }
 0x1e6   : > { %1205 = vmatmul.f32.gmra.mxu3 %v2856_v40  ;;  %1225 = vmatpush.msrb.mxu0 %v1048_v60  ;;  %v2899_v60 = vld [vmem:[%s3697_s4 + $0x48] sm:$0xff] }
 0x1e7   : > { %1937 = vmatpush.msk.msra.mxu3 %vm561_vm12, %v2439_v55  ;;  %2029 = vmatpush.msk.msra.mxu1 %vm627_vm0, %v2634_v10 }
 0x1e8   : > { %1226 = vmatpush.msrb.mxu0 %v1047_v42  ;;  %535 = vrot.lane.b32.xlu0 %v2775_v32, %s2205_s25 }
 0x1e9   : > { %1938 = vmatpush.msk.msra.mxu3 %vm561_vm12, %v2429_v49  ;;  %v2890_v55 = vpop.permute.xlu0 %2113  ;;  %1173 = vmatmul.f32.gmra.mxu2 %v2871_v46  ;;  %v2893_v34 = vpop.permute.xlu1 %2068 }
 0x1ea   : > { %v2094_v52 = vpop.permute.xlu2 %2093 }
 0x1eb   : > { %v2096_v33 = vunpack.i.h.bf16 %v2094_v52  ;;  %v2095_v19 = vunpack.i.l.bf16 %v2094_v52  ;;  %1332 = vmatpush.msra.mxu3 %v2302_v15  ;;  %v2910_v15 = vld [vmem:[%s3697_s4 + $0x60] sm:$0xff] }
 0x1ed   : > { %1333 = vmatpush.msra.mxu3 %v2290_v13  ;;  %v1032_v49 = vsel %vm1030_vm2, %v2095_v19, %v2788_v39  ;;  %v1031_v42 = vsel %vm1030_vm2, %v2096_v33, %v2732_v58  ;;  %v2920_v13 = vld [vmem:[%s3697_s4 + $0x98] sm:$0xff] }
 0x1ee   : > { %1208 = vmatmul.f32.gmra.mxu3 %v2899_v60  ;;  %1227 = vmatpush.msrb.mxu0 %v1032_v49  ;;  %3729 = vst [vmem:[#allocation9_spill] sm:$0xff] %v2920_v13 }
 0x1ef   : > { %1939 = vmatpush.msk.msra.mxu3 %vm518_vm15, %v2534_v25  ;;  %1931 = vmatmul.msk.f32.gmra.mxu1 %vm596_vm13, %v2920_v13  ;;  %v2115_v13 = vunpack.i.l.bf16 %v2890_v55 }
 0x1f0   : > { %1228 = vmatpush.msrb.mxu0 %v1031_v42  ;;  %v373_v42 = vld [vmem:[%s3698_s5 + $0x18] sm:$0xff] }
 0x1f1   : > { %1940 = vmatpush.msk.msra.mxu3 %vm518_vm15, %v2519_v20  ;;  %v2925_v52 = vpop.permute.xlu0 %964  ;;  %1176 = vmatmul.f32.gmra.mxu2 %v2910_v15  ;;  %v2928_v19 = vpop.permute.xlu1 %976  ;;  %v2938_v20 = vld [vmem:[%s3697_s4 + $0x68] sm:$0xff] }
 0x1f2   : > { %v2099_v25 = vpop.permute.xlu2 %2098  ;;  %2030 = vmatpush.msk.msra.mxu1 %vm627_vm0, %v2928_v19  ;;  %1120 = vperm.xlu2 %2153, %v373_v42  }
 0x1f3   : > { %v2101_v33 = vunpack.i.h.bf16 %v2099_v25  ;;  %v2100_v49 = vunpack.i.l.bf16 %v2099_v25  ;;  %1941 = vmatpush.msk.msra.mxu3 %vm689_vm4, %v2474_v4  ;;  %v2105_v25 = vunpack.i.l.bf16 %v2841_v38 }
 0x1f4   : > { %2031 = vmatpush.msk.msra.mxu1 %vm627_vm0, %v2925_v52 }
 0x1f5   : > { %1942 = vmatpush.msk.msra.mxu3 %vm689_vm4, %v2367_v28  ;;  %v1015_v4 = vsel %vm627_vm0, %v2100_v49, %v2623_v63  ;;  %v1014_v30 = vsel %vm627_vm0, %v2101_v33, %v2627_v5  ;;  %v2965_v28 = vld [vmem:[%s3697_s4 + $0xb8] sm:$0xff]  ;;  %v2070_v49 = vunpack.i.l.bf16 %v2893_v34  ;;  %v2978_v33 = vld [vmem:[%s3697_s4 + $0x88] sm:$0xff] }
 0x1f6   : > { %1211 = vmatmul.f32.gmra.mxu3 %v2938_v20  ;;  %1229 = vmatpush.msrb.mxu0 %v1015_v4  ;;  %3730 = vst [vmem:[#allocation10_spill] sm:$0xff] %v2965_v28  ;;  %v999_v4 = vsel %vm627_vm0, %v2105_v25, %v2844_v54  ;;  %v2071_v25 = vunpack.i.h.bf16 %v2893_v34  ;;  %v2998_v34 = vld [vmem:[%s3697_s4 + $0xa0] sm:$0xff] }
 0x1f7   : > { %1932 = vmatmul.msk.f32.gmra.mxu1 %vm596_vm13, %v2965_v28 }
 0x1f8   : > { %1230 = vmatpush.msrb.mxu0 %v1014_v30  ;;  %v998_v30 = vsel %vm627_vm0, %v2106_v11, %v2630_v7 }
 0x1f9   : > { %v2968_v42 = vpop.permute.xlu0 %2123  ;;  %1179 = vmatmul.f32.gmra.mxu2 %v2957_v1  ;;  %v2074_v21 = vpop.permute.xlu1 %2073 }
 0x1fa   : > { %v2109_v32 = vpop.permute.xlu2 %2108  ;;  %1231 = vmatpush.msrb.mxu0 %v999_v4  ;;  %v983_v4 = vsel %vm627_vm0, %v2070_v49, %v2634_v10  ;;  %496 = vrot.lane.b32.xlu2 %v2982_v26, %s2203_s23  ;;  %v2116_v49 = vunpack.i.h.bf16 %v2890_v55  ;;  %v3009_v55 = vld [vmem:[%s3697_s4 + $0xa8] sm:$0xff] }
 0x1fb   : > { %v2110_v38 = vunpack.i.l.bf16 %v2109_v32  ;;  %v2111_v3 = vunpack.i.h.bf16 %v2109_v32  ;;  %v982_v32 = vsel %vm627_vm0, %v2071_v25, %v2928_v19  ;;  %v871_v25 = vsel %vm596_vm13, %v2647_v31, %v2115_v13  ;;  %v3017_v31 = vpop.f32.mrf.mxu3 }
 0x1fc   : > { %1232 = vmatpush.msrb.mxu0 %v998_v30  ;;  %v2075_v30 = vunpack.i.l.bf16 %v2074_v21  ;;  %v2125_v13 = vunpack.i.l.bf16 %v2968_v42 }
 0x1fd   : > { %v887_v11 = vsel %vm596_vm13, %v2613_v62, %v2110_v38  ;;  %v886_v62 = vsel %vm596_vm13, %v2573_v41, %v2111_v3  ;;  %v870_v41 = vsel %vm596_vm13, %v2595_v50, %v2116_v49 }
 0x1fe   : > { %1214 = vmatmul.f32.gmra.mxu3 %v2978_v33  ;;  %1233 = vmatpush.msrb.mxu0 %v983_v4 }
 0x1ff   : > { %1293 = vmatpush.msra.mxu2 %v887_v11 }
 0x200   : > { %1234 = vmatpush.msrb.mxu0 %v982_v32  ;;  %v2076_v32 = vunpack.i.h.bf16 %v2074_v21  ;;  %v855_v21 = vsel %vm777_vm1, %v2637_v12, %v2075_v30  ;;  %v835_v12 = vsel %vm777_vm1, %v2639_v61, %v2125_v13  ;;  %v356_v61 = vld [vmem:[%s3697_s4 + $0x90] sm:$0xff] }
 0x201   : > { %1294 = vmatpush.msra.mxu2 %v886_v62  ;;  %v2134_v38 = vpop.permute.xlu0 %2133  ;;  %v2129_v49 = vpop.permute.xlu1 %2128 }
 0x202   : > { %v2136_v26 = vunpack.i.h.bf16 %v2134_v38  ;;  %v2135_v4 = vunpack.i.l.bf16 %v2134_v38  ;;  %v2119_v11 = vpop.permute.xlu2 %2118  ;;  %1182 = vmatmul.f32.gmra.mxu2 %v2998_v34  ;;  %502 = vrot.lane.b32.xlu2 %v3017_v31, %s2203_s23 }
 0x203   : > { %v2120_v28 = vunpack.i.l.bf16 %v2119_v11  ;;  %1295 = vmatpush.msra.mxu2 %v871_v25  ;;  %v2121_v38 = vunpack.i.h.bf16 %v2119_v11 }
 0x204   : > { %v935_v3 = vsel %vm596_vm13, %v2694_v14, %v2135_v4  ;;  %v934_v50 = vsel %vm596_vm13, %v2604_v48, %v2136_v26  ;;  %v2126_v14 = vunpack.i.h.bf16 %v2968_v42  ;;  %v2130_v4 = vunpack.i.l.bf16 %v2129_v49  ;;  %v3037_v26 = vld [vmem:[%s3697_s4 + $0x10] sm:$0xff] }
 0x205   : > { %1296 = vmatpush.msra.mxu2 %v870_v41  ;;  %v967_v62 = vsel %vm627_vm0, %v2120_v28, %v2925_v52  ;;  %1338 = vmatpush.msra.mxu3 %v935_v3  ;;  %v854_v28 = vsel %vm777_vm1, %v2583_v29, %v2076_v32  ;;  %v2131_v48 = vunpack.i.h.bf16 %v2129_v49 }
 0x206   : > { %1217 = vmatmul.f32.gmra.mxu3 %v3009_v55  ;;  %1235 = vmatpush.msrb.mxu0 %v967_v62  ;;  %v834_v42 = vsel %vm777_vm1, %v2581_v18, %v2126_v14  ;;  %v815_v30 = vsel %vm777_vm1, %v2565_v37, %v2130_v4  ;;  %v344_v37 = vld [vmem:[%s3697_s4 + $0x30] sm:$0xff] }
 0x207   : > { %1297 = vmatpush.msra.mxu2 %v855_v21  ;;  %1339 = vmatpush.msra.mxu3 %v934_v50  ;;  %v814_v18 = vsel %vm777_vm1, %v2461_v0, %v2131_v48 }
 0x209   : > { %1298 = vmatpush.msra.mxu2 %v854_v28 }
 0x20a   : > { %v3030_v25 = vpop.permute.xlu2 %960 }
 0x20b   : > { %1299 = vmatpush.msra.mxu2 %v835_v12  ;;  %2032 = vmatpush.msk.msra.mxu1 %vm627_vm0, %v3030_v25  ;;  %v966_v29 = vsel %vm627_vm0, %v2121_v38, %v3030_v25 }
 0x20c   : > { %1236 = vmatpush.msrb.mxu0 %v966_v29  ;;  %1389 = vmatmul.f32.vlgmr.msra.gmra.mxu1 %v356_v61 }
 0x20d   : > { %1959 = vmatpush.msk.msrb.mxu1 %vm1030_vm2, %v2632_v8  ;;  %1300 = vmatpush.msra.mxu2 %v834_v42  ;;  %v2144_v8 = vpop.permute.xlu1 %2143 }
 0x20e   : > { %1237 = vmatmul.f32.vlgmr.msrb.gmra.mxu0 %v3037_v26  ;;  %v2145_v0 = vunpack.i.l.bf16 %v2144_v8 }
 0x20f   : > { %1943 = vmatpush.msk.msra.mxu0 %vm1030_vm2, %v2609_v57  ;;  %1960 = vmatpush.msk.msrb.mxu1 %vm1030_vm2, %v2591_v45 }
 0x210   : > { %1301 = vmatpush.msra.mxu2 %v815_v30 }
 0x211   : > { %1944 = vmatpush.msk.msra.mxu0 %vm1030_vm2, %v2602_v53  ;;  %v360_v53 = vld [vmem:[%s3697_s4 + $0xb0] sm:$0xff] }
 0x212   : > { %1302 = vmatpush.msra.mxu2 %v814_v18  ;;  %v2139_v57 = vpop.permute.xlu2 %2138 }
 0x213   : > { %1945 = vmatpush.msk.msra.mxu0 %vm1030_vm2, %v2431_v51  ;;  %v2141_v11 = vunpack.i.h.bf16 %v2139_v57  ;;  %v2140_v45 = vunpack.i.l.bf16 %v2139_v57  ;;  %v2146_v51 = vunpack.i.h.bf16 %v2144_v8 }
 0x214   : > { %1392 = vmatmul.f32.gmra.mxu1 %v360_v53 }
 0x215   : > { %1946 = vmatpush.msk.msra.mxu0 %vm1030_vm2, %v2412_v43  ;;  %v799_v32 = vsel %vm777_vm1, %v2652_v35, %v2140_v45  ;;  %v798_v41 = vsel %vm777_vm1, %v2593_v47, %v2141_v11  ;;  %v779_v43 = vsel %vm777_vm1, %v2689_v27, %v2145_v0  ;;  %v778_v47 = vsel %vm777_vm1, %v2611_v59, %v2146_v51  ;;  %v352_v59 = vld [vmem:[%s3697_s4 + $0x70] sm:$0xff] }
 0x216   : > { %1240 = vmatmul.f32.gmra.mxu0 %v344_v37  ;;  %1303 = vmatpush.msra.mxu2 %v799_v32 }
 0x217   : > { %1947 = vmatpush.msk.msra.mxu0 %vm1030_vm2, %v2730_v17  ;;  %v348_v17 = vld [vmem:[%s3697_s4 + $0x50] sm:$0xff] }
 0x218   : > { %1304 = vmatpush.msra.mxu2 %v798_v41 }
 0x219   : > { %1948 = vmatpush.msk.msra.mxu0 %vm1030_vm2, %v2691_v56 }
 0x21a   : > { %v2149_v35 = vpop.permute.xlu2 %2148  ;;  %1305 = vmatpush.msra.mxu2 %v779_v43 }
 0x21b   : > { %1949 = vmatpush.msk.msra.mxu0 %vm1030_vm2, %v2788_v39  ;;  %v2151_v3 = vunpack.i.h.bf16 %v2149_v35  ;;  %v2150_v62 = vunpack.i.l.bf16 %v2149_v35 }
 0x21c   : > { %1306 = vmatpush.msra.mxu2 %v778_v47  ;;  %1961 = vmatmul.msk.f32.vlgmr.msrb.gmra.mxu1 %vm596_vm13, %v2705_v36 }
 0x21d   : > { %1950 = vmatpush.msk.msra.mxu0 %vm1030_vm2, %v2732_v58  ;;  %1307 = vmatmul.f32.vlgmr.msra.gmra.mxu2 %v2771_v22  ;;  %v919_v27 = vsel %vm596_vm13, %v2795_v16, %v2150_v62  ;;  %v918_v56 = vsel %vm596_vm13, %v2625_v2, %v2151_v3  ;;  %v3133_v2 = vpop.permute.xlu1 %1125 }
 0x21e   : > { %1243 = vmatmul.f32.gmra.mxu0 %v348_v17  ;;  %1340 = vmatpush.msra.mxu3 %v919_v27 }
 0x21f   : > { %1951 = vmatpush.msk.msra.mxu0 %vm627_vm0, %v2623_v63  ;;  %v3732_v63 = vld [vmem:[#allocation9_spill] sm:$0xff] }
 0x220   : > { %1341 = vmatpush.msra.mxu3 %v918_v56 }
 0x221   : > { %1952 = vmatpush.msk.msra.mxu0 %vm627_vm0, %v2627_v5  ;;  %1342 = vmatmul.f32.vlgmr.msra.gmra.mxu3 %v2807_v23  ;;  %v3135_v5 = vpop.permute.xlu0 %1130 }
 0x223   : > { %1953 = vmatpush.msk.msra.mxu0 %vm627_vm0, %v2844_v54 }
 0x224   : > { %1962 = vmatmul.msk.f32.gmra.mxu1 %vm596_vm13, %v2750_v6 }
 0x225   : > { %1954 = vmatpush.msk.msra.mxu0 %vm627_vm0, %v2630_v7  ;;  %1310 = vmatmul.f32.gmra.mxu2 %v2824_v9  ;;  %v3733_v7 = vld [vmem:[#allocation10_spill] sm:$0xff] }
 0x226   : > { %1246 = vmatmul.f32.gmra.mxu0 %v352_v59 }
 0x227   : > { %1955 = vmatpush.msk.msra.mxu0 %vm627_vm0, %v2634_v10 }
 0x229   : > { %1956 = vmatpush.msk.msra.mxu0 %vm627_vm0, %v2928_v19  ;;  %1345 = vmatmul.f32.gmra.mxu3 %v2856_v40 }
 0x22b   : > { %1957 = vmatpush.msk.msra.mxu0 %vm627_vm0, %v2925_v52 }
 0x22c   : > { %1963 = vmatmul.msk.f32.gmra.mxu1 %vm596_vm13, %v2835_v44 }
 0x22d   : > { %1958 = vmatpush.msk.msra.mxu0 %vm627_vm0, %v3030_v25  ;;  %1313 = vmatmul.f32.gmra.mxu2 %v2871_v46 }
 0x22e   : > { %1249 = vmatmul.f32.gmra.mxu0 %v356_v61 }
 0x231   : > { %1348 = vmatmul.f32.gmra.mxu3 %v2899_v60 }
 0x234   : > { %1964 = vmatmul.msk.f32.gmra.mxu1 %vm596_vm13, %v2883_v24 }
 0x235   : > { %1316 = vmatmul.f32.gmra.mxu2 %v2910_v15 }
 0x236   : > { %1252 = vmatmul.f32.gmra.mxu0 %v360_v53 }
 0x238   : > { %v3142_v10 = vpop.permute.xlu0 %492 }
 0x239   : > { %1351 = vmatmul.f32.gmra.mxu3 %v2938_v20 }
 0x23c   : > { %1965 = vmatmul.msk.f32.gmra.mxu1 %vm596_vm13, %v3732_v63 }
 0x23d   : > { %1319 = vmatmul.f32.gmra.mxu2 %v2957_v1 }
 0x23e   : > { %1377 = vmatmul.f32.vlgmr.msra.gmra.mxu0 %v3037_v26  ;;  %v495_v1 = vpop.permute.xlu1 %494 }
 0x23f   : > { %v3146_v36 = vsel %vm504_vm5, %v3142_v10, %v495_v1 }
 0x241   : > { %1354 = vmatmul.f32.gmra.mxu3 %v2978_v33 }
 0x244   : > { %1966 = vmatmul.msk.f32.gmra.mxu1 %vm596_vm13, %v3733_v7 }
 0x245   : > { %1322 = vmatmul.f32.gmra.mxu2 %v2998_v34  ;;  %v3150_v6 = vpop.f32.mrf.mxu1 }
 0x246   : > { %1380 = vmatmul.f32.gmra.mxu0 %v344_v37 }
 0x249   : > { %1357 = vmatmul.f32.gmra.mxu3 %v3009_v55 }
 0x24c   : > { %v3148_v58 = vpop.permute.xlu2 %1120 }
 0x24e   : > { %1383 = vmatmul.f32.gmra.mxu0 %v348_v17 }
 0x250   : > { %v3158_v23 = vpop.f32.mrf.mxu1 }
 0x252   : > { %v499_v22 = vpop.permute.xlu0 %498 }
 0x254   : > { %v3152_v39 = vpop.permute.xlu2 %496 }
 0x255   : > { %v3156_v16 = vsel %vm504_vm5, %v3152_v39, %v499_v22 }
 0x256   : > { %1386 = vmatmul.f32.gmra.mxu0 %v352_v59 }
 0x258   : > { %v3160_v9 = vpop.f32.mrf.mxu1 }
 0x25c   : > { %v3162_v44 = vpop.f32.mrf.mxu2 }
 0x260   : > { %v1282_v40 = vpop.f32.mrf.mxu1 }
 0x261   : > { %v3164_v54 = vpop.f32.mrf.mxu3 }
 0x264   : > { %v3166_v46 = vpop.f32.mrf.mxu2 }
 0x269   : > { %v3168_v24 = vpop.f32.mrf.mxu3 }
 0x26c   : > { %v1285_v60 = vpop.f32.mrf.mxu1  ;;  %v3170_v15 = vpop.f32.mrf.mxu2 }
 0x271   : > { %v3172_v52 = vpop.f32.mrf.mxu3 }
 0x274   : > { %v1288_v19 = vpop.f32.mrf.mxu1  ;;  %v1177_v20 = vpop.f32.mrf.mxu2 }
 0x275   : > { %v1178_v38 = vadd.f32 %v1177_v20, %v3148_v58 }
 0x279   : > { %v1212_v33 = vpop.f32.mrf.mxu3 }
 0x27a   : > { %v1213_v12 = vadd.f32 %v1212_v33, %v1178_v38 }
 0x27c   : > { %v1180_v13 = vpop.f32.mrf.mxu2 }
 0x27d   : > { %v1181_v48 = vadd.f32 %v1180_v13, %v3133_v2 }
 0x281   : > { %v1215_v21 = vpop.f32.mrf.mxu3 }
 0x282   : > { %v1216_v8 = vadd.f32 %v1215_v21, %v1181_v48 }
 0x285   : > { %v1183_v14 = vpop.f32.mrf.mxu2 }
 0x286   : > { %v1184_v0 = vadd.f32 %v1183_v14, %v3135_v5 }
 0x289   : > { %v1390_v55 = vpop.f32.mrf.mxu1  ;;  %v1218_v4 = vpop.f32.mrf.mxu3 }
 0x28a   : > { %v1219_v43 = vadd.f32 %v1218_v4, %v1184_v0  ;;  %v3264_v0 = vpop.permute.xlu0 %535 }
 0x28b   : > { %v3174_v34 = vpop.f32.mrf.mxu0 }
 0x291   : > { %v1393_v49 = vpop.f32.mrf.mxu1 }
 0x293   : > { %v3176_v50 = vpop.f32.mrf.mxu0 }
 0x299   : > { %v3181_v25 = vpop.f32.mrf.mxu1 }
 0x29b   : > { %v3178_v28 = vpop.f32.mrf.mxu0 }
 0x2a0   : > { %v3183_v26 = vpop.f32.mrf.mxu2 }
 0x2a1   : > { %v3190_v18 = vpop.f32.mrf.mxu1 }
 0x2a2   : > { %3734 = vst [vmem:[#allocation9_spill] sm:$0xff] %v3190_v18 }
 0x2a3   : > { %v1247_v29 = vpop.f32.mrf.mxu0 }
 0x2a4   : > { %v1248_v42 = vadd.f32 %v1247_v29, %v1213_v12  ;;  %v3186_v61 = vpop.f32.mrf.mxu3 }
 0x2a6   : > { %v3188_v30 = vadd.f32 %v1282_v40, %v1248_v42 }
 0x2a8   : > { %1527 = vrot.lane.b32.xlu2 %v3188_v30, %s2207_s28  ;;  %1467 = vrot.lane.b32.xlu1 %v3188_v30, %s2205_s25  ;;  %v3196_v57 = vpop.f32.mrf.mxu2 }
 0x2a9   : > { %v3211_v41 = vpop.f32.mrf.mxu1 }
 0x2ab   : > { %v1250_v37 = vpop.f32.mrf.mxu0 }
 0x2ac   : > { %v1251_v11 = vadd.f32 %v1250_v37, %v1216_v8  ;;  %v3198_v45 = vpop.f32.mrf.mxu3 }
 0x2ae   : > { %v3200_v53 = vadd.f32 %v1285_v60, %v1251_v11 }
 0x2b0   : > { %1471 = vrot.lane.b32.xlu2 %v3200_v53, %s2205_s25  ;;  %1437 = vrot.lane.b32.xlu1 %v3188_v30, %s2203_s23  ;;  %v2154_v32 = vpack.i.bf16 %v3188_v30, %v3200_v53  ;;  %v3209_v51 = vpop.f32.mrf.mxu2 }
 0x2b1   : > { %v1422_v56 = vpop.f32.mrf.mxu1 }
 0x2b2   : > { %2155 = vrot.lane.b32.xlu0 %v2154_v32, %s2210_s9 }
 0x2b3   : > { %v1253_v35 = vpop.f32.mrf.mxu0 }
 0x2b4   : > { %v1254_v17 = vadd.f32 %v1253_v35, %v1219_v43  ;;  %v3214_v3 = vpop.f32.mrf.mxu3 }
 0x2b6   : > { %v3216_v62 = vadd.f32 %v1288_v19, %v1254_v17 }
 0x2b8   : > { %1441 = vrot.lane.b32.xlu2 %v3200_v53, %s2203_s23  ;;  %1531 = vrot.lane.b32.xlu1 %v3200_v53, %s2207_s28  ;;  %v1317_v47 = vpop.f32.mrf.mxu2 }
 0x2b9   : > { %v1425_v40 = vpop.f32.mrf.mxu1  ;;  %v1318_v12 = vadd.f32 %v1317_v47, %v3148_v58 }
 0x2ba   : > { %1475 = vrot.lane.b32.xlu0 %v3216_v62, %s2205_s25 }
 0x2bb   : > { %v3224_v27 = vpop.f32.mrf.mxu0 }
 0x2bc   : > { %v1352_v59 = vpop.f32.mrf.mxu3 }
 0x2bd   : > { %v1353_v29 = vadd.f32 %v1352_v59, %v1318_v12 }
 0x2c0   : > { %1535 = vrot.lane.b32.xlu2 %v3216_v62, %s2207_s28  ;;  %v1320_v63 = vpop.f32.mrf.mxu2 }
 0x2c1   : > { %v1321_v1 = vadd.f32 %v1320_v63, %v3133_v2  ;;  %v1428_v4 = vpop.f32.mrf.mxu1 }
 0x2c2   : > { %1445 = vrot.lane.b32.xlu0 %v3216_v62, %s2203_s23 }
 0x2c3   : > { %v3230_v7 = vpop.f32.mrf.mxu0 }
 0x2c4   : > { %v1355_v22 = vpop.f32.mrf.mxu3 }
 0x2c5   : > { %v1356_v60 = vadd.f32 %v1355_v22, %v1321_v1 }
 0x2c7   : > { %v1391_v19 = vadd.f32 %v1390_v55, %v1356_v60 }
 0x2c8   : > { %v1323_v20 = vpop.f32.mrf.mxu2 }
 0x2c9   : > { %v3233_v33 = vadd.f32 %v1425_v40, %v1391_v19  ;;  %v1324_v21 = vadd.f32 %v1323_v20, %v3135_v5  ;;  %v3256_v5 = vpop.permute.xlu2 %502  ;;  %v379_v19 = vld [vmem:[%s3696_s3] sm:$0xff] }
 0x2cb   : > { %v3235_v13 = vpop.f32.mrf.mxu0  ;;  %1611 = vrot.lane.b32.xlu1 %v3233_v33, %s2210_s9 }
 0x2cc   : > { %v1358_v14 = vpop.f32.mrf.mxu3 }
 0x2cd   : > { %v1359_v38 = vadd.f32 %v1358_v14, %v1324_v21 }
 0x2cf   : > { %v1394_v2 = vadd.f32 %v1393_v49, %v1359_v38  ;;  %v3260_v49 = vpop.permute.xlu1 %500 }
 0x2d1   : > { %v1429_v48 = vadd.f32 %v1428_v4, %v1394_v2 }
 0x2d3   : > { %v1387_v42 = vpop.f32.mrf.mxu0  ;;  %1477 = vrot.lane.b32.xlu1 %v1429_v48, %s2205_s25 }
 0x2d4   : > { %v1388_v55 = vadd.f32 %v1387_v42, %v1353_v29 }
 0x2d6   : > { %v3242_v8 = vadd.f32 %v1422_v56, %v1388_v55 }
 0x2d7   : > { %v3262_v11 = vpop.permute.xlu1 %537 }
 0x2d8   : > { %1607 = vrot.lane.b32.xlu0 %v3242_v8, %s2210_s9  ;;  %1469 = vrot.lane.b32.xlu2 %v3242_v8, %s2205_s25 }
 0x2db   : > { %1447 = vrot.lane.b32.xlu1 %v1429_v48, %s2203_s23 }
 0x2e0   : > { %1473 = vrot.lane.b32.xlu0 %v3233_v33, %s2205_s25  ;;  %1439 = vrot.lane.b32.xlu2 %v3242_v8, %s2203_s23 }
 0x2e8   : > { %1443 = vrot.lane.b32.xlu0 %v3233_v33, %s2203_s23 }
 0x2f0   : > { %1615 = vrot.lane.b32.xlu0 %v1429_v48, %s2210_s9 }
 0x302   : > { %v3258_v58 = vpop.permute.xlu2 %1527 }
 0x30a   : > { %v1472_v37 = vpop.permute.xlu2 %1471 }
 0x312   : > { %v1442_v32 = vpop.permute.xlu2 %1441 }
 0x313   : > { %v1459_v63 = vsel %vm504_vm5, 0.0, %v1442_v32 }
 0x314   : > { %v3283_v38 = vsel %vm517_vm6, %v1459_v63, 0.0 }
 0x31a   : > { %v1468_v43 = vpop.permute.xlu1 %1467  ;;  %v3268_v17 = vpop.permute.xlu2 %1535 }
 0x322   : > { %v1438_v47 = vpop.permute.xlu1 %1437 }
 0x324   : > { %v3266_v35 = vpop.permute.xlu0 %2155 }
 0x32a   : > { %v3285_v4 = vpop.permute.xlu1 %1531 }
 0x32c   : > { %v1476_v56 = vpop.permute.xlu0 %1475 }
 0x332   : > { %v1470_v59 = vpop.permute.xlu2 %1469 }
 0x333   : > { %v1479_v1 = vsel %vm547_vm7, %v1468_v43, %v1470_v59  ;;  %v1488_v22 = vsel %vm547_vm7, %v1470_v59, 0.0 }
 0x334   : > { %v1446_v40 = vpop.permute.xlu0 %1445  ;;  %1967 = vmatpush.msk.msrb.mxu2 %vm560_vm8, %v1479_v1  ;;  %1994 = vmatpush.msk.msrb.mxu0 %vm561_vm12, %v1488_v22  ;;  %v1492_v20 = vsel %vm561_vm12, %v1488_v22, 0.0  ;;  %v1491_v29 = vsel %vm560_vm8, %v1479_v1, 0.0 }
 0x335   : > { %v1460_v21 = vsel %vm504_vm5, 0.0, %v1446_v40  ;;  %v2169_v14 = vpack.i.bf16 %v1429_v48, %v1492_v20  ;;  %1631 = vrot.lane.b32.xlu1 %v1492_v20, %s2210_s9  ;;  %v2164_v42 = vpack.i.bf16 %v3216_v62, %v1491_v29 }
 0x336   : > { %v1465_v12 = vsel %vm517_vm6, %v1460_v21, 0.0  ;;  %1679 = vmatpush.msrb.mxu2 %v3216_v62  ;;  %1731 = vmatpush.msrb.mxu0 %v1429_v48  ;;  %v1458_v48 = vsel %vm504_vm5, 0.0, %v1438_v47 }
 0x337   : > { %v2159_v2 = vpack.i.bf16 %v3283_v38, %v1465_v12  ;;  %2170 = vrot.lane.b32.xlu2 %v2169_v14, %s2207_s28 }
 0x338   : > { %1680 = vmatpush.msrb.mxu2 %v3200_v53  ;;  %1732 = vmatpush.msrb.mxu0 %v3233_v33 }
 0x339   : > { %2160 = vrot.lane.b32.xlu0 %v2159_v2, %s2210_s9 }
 0x33a   : > { %1733 = vmatpush.msrb.mxu0 %v3242_v8  ;;  %1681 = vmatpush.msrb.mxu2 %v3188_v30 }
 0x33c   : > { %1968 = vmatpush.msk.msrb.mxu2 %vm517_vm6, %v1460_v21 }
 0x33d   : > { %1557 = vrot.lane.b32.xlu1 %v1491_v29, %s2207_s28  ;;  %v3304_v53 = vpop.permute.xlu1 %1611 }
 0x33e   : > { %1969 = vmatpush.msk.msrb.mxu2 %vm517_vm6, %v1459_v63 }
 0x340   : > { %1970 = vmatpush.msk.msrb.mxu2 %vm517_vm6, %v1458_v48 }
 0x341   : > { %2165 = vrot.lane.b32.xlu0 %v2164_v42, %s2210_s9 }
 0x345   : > { %v1478_v30 = vpop.permute.xlu1 %1477 }
 0x346   : > { %v3312_v55 = vsel %vm547_vm7, %v1478_v30, 0.0 }
 0x347   : > { %v1496_v43 = vsel %vm561_vm12, %v3312_v55, 0.0 }
 0x349   : > { %1639 = vrot.lane.b32.xlu0 %v1496_v43, %s2210_s9 }
 0x34a   : > { %v3318_v59 = vpop.permute.xlu0 %1607 }
 0x34d   : > { %v1448_v63 = vpop.permute.xlu1 %1447 }
 0x34e   : > { %v1451_v62 = vsel %vm504_vm5, %v1446_v40, %v1448_v63  ;;  %v3338_v40 = vsel %vm547_vm7, %v1476_v56, %v1478_v30  ;;  %v1461_v56 = vsel %vm517_vm6, %v1458_v48, 0.0  ;;  %v2179_v30 = vpack.i.bf16 %v3242_v8, %v3233_v33  ;;  %v3737_v48 = vld [vmem:[#allocation11_spill] sm:$0xff] }
 0x34f   : > { %1995 = vmatpush.msk.msrb.mxu0 %vm518_vm15, %v1451_v62  ;;  %v1495_v29 = vsel %vm560_vm8, %v3338_v40, 0.0  ;;  %v514_v33 = vsel %vm504_vm5, 0.0, %v3142_v10 }
 0x350   : > { %v523_v8 = vsel %vm517_vm6, %v514_v33, 0.0 }
 0x352   : > { %v1474_v1 = vpop.permute.xlu0 %1473 }
 0x353   : > { %v3324_v22 = vsel %vm547_vm7, %v1472_v37, %v1474_v1  ;;  %v3327_v20 = vsel %vm547_vm7, %v1474_v1, 0.0  ;;  %v1440_v37 = vpop.permute.xlu2 %1439 }
 0x354   : > { %v1493_v21 = vsel %vm560_vm8, %v3324_v22, 0.0  ;;  %v1494_v14 = vsel %vm561_vm12, %v3327_v20, 0.0  ;;  %v1449_v18 = vsel %vm504_vm5, %v1438_v47, %v1440_v37  ;;  %v1466_v47 = vsel %vm518_vm15, %v1451_v62, 0.0 }
 0x355   : > { %1561 = vrot.lane.b32.xlu2 %v1493_v21, %s2207_s28  ;;  %1635 = vrot.lane.b32.xlu1 %v1494_v14, %s2210_s9  ;;  %v2174_v63 = vpack.i.bf16 %v1493_v21, %v1495_v29  ;;  %v548_v62 = vsel %vm547_vm7, %v3264_v0, %v3262_v11  ;;  %v3739_v21 = vld [vmem:[#allocation7_spill] sm:$0xff]  ;;  %v524_v0 = vsel %vm518_vm15, %v3146_v36, 0.0 }
 0x356   : > { %v566_v10 = vsel %vm560_vm8, %v548_v62, 0.0 }
 0x35a   : > { %v1444_v2 = vpop.permute.xlu0 %1443 }
 0x35b   : > { %v1450_v42 = vsel %vm504_vm5, %v1442_v32, %v1444_v2  ;;  %v1462_v32 = vsel %vm518_vm15, %v1449_v18, 0.0  ;;  %v557_v2 = vsel %vm547_vm7, %v3262_v11, 0.0 }
 0x35c   : > { %1996 = vmatpush.msk.msrb.mxu0 %vm518_vm15, %v1450_v42  ;;  %v1464_v1 = vsel %vm518_vm15, %v1450_v42, 0.0 }
 0x35d   : > { %1511 = vrot.lane.b32.xlu1 %v1465_v12, %s2207_s28  ;;  %1587 = vrot.lane.b32.xlu0 %v1464_v1, %s2210_s9  ;;  %v2184_v12 = vpack.i.bf16 %v1494_v14, %v1496_v43  ;;  %v3738_v43 = vld [vmem:[#allocation8_spill] sm:$0xff]  ;;  %v529_v14 = vadd.f32 %v523_v8, %v3739_v21 }
 0x35e   : > { %2175 = vrot.lane.b32.xlu2 %v2174_v63, %s2210_s9  ;;  %1997 = vmatpush.msk.msrb.mxu0 %vm518_vm15, %v1449_v18  ;;  %v2189_v18 = vpack.i.bf16 %v1464_v1, %v1466_v47  ;;  %v567_v63 = vsel %vm561_vm12, %v557_v2, 0.0 }
 0x35f   : > { %v3388_v37 = vadd.f32 %v566_v10, %v529_v14 }
 0x365   : > { %1583 = vrot.lane.b32.xlu1 %v1462_v32, %s2210_s9  ;;  %1581 = vrot.lane.b32.xlu0 %v1461_v56, %s2210_s9 }
 0x366   : > { %2180 = vrot.lane.b32.xlu2 %v2179_v30, %s2207_s28 }
 0x36d   : > { %1503 = vrot.lane.b32.xlu0 %v1461_v56, %s2207_s28  ;;  %1591 = vrot.lane.b32.xlu1 %v1466_v47, %s2210_s9 }
 0x36e   : > { %1565 = vrot.lane.b32.xlu2 %v1495_v29, %s2207_s28  ;;  %v3741_v29 = vld [vmem:[#allocation5_spill] sm:$0xff] }
 0x36f   : > { %v530_v42 = vadd.f32 %v524_v0, %v3741_v29 }
 0x371   : > { %v3403_v1 = vadd.f32 %v567_v63, %v530_v42 }
 0x375   : > { %539 = vrot.lane.b32.xlu0 %v3737_v48, %s2205_s25  ;;  %2190 = vrot.lane.b32.xlu1 %v2189_v18, %s2207_s28 }
 0x376   : > { %2185 = vrot.lane.b32.xlu2 %v2184_v12, %s2207_s28 }
 0x37d   : > { %545 = vrot.lane.b32.xlu0 %v3017_v31, %s2205_s25  ;;  %541 = vrot.lane.b32.xlu1 %v3738_v43, %s2205_s25 }
 0x37e   : > { %1507 = vrot.lane.b32.xlu2 %v3283_v38, %s2207_s28  ;;  %v3740_v38 = vld [vmem:[#allocation6_spill] sm:$0xff] }
 0x385   : > { %584 = vrot.lane.b32.xlu1 %v3388_v37, %s2207_s28 }
 0x386   : > { %1505 = vrot.lane.b32.xlu2 %v1462_v32, %s2207_s28  ;;  %v1616_v32 = vpop.permute.xlu0 %1615 }
 0x38e   : > { %543 = vrot.lane.b32.xlu2 %v3740_v38, %s2205_s25 }
 0x391   : > { %v3407_v56 = vpop.permute.xlu2 %2170 }
 0x396   : > { %586 = vrot.lane.b32.xlu2 %v3403_v1, %s2207_s28 }
 0x3a7   : > { %v1632_v47 = vpop.permute.xlu1 %1631 }
 0x3ab   : > { %v3409_v36 = vpop.permute.xlu0 %2160 }
 0x3af   : > { %v1562_v30 = vpop.permute.xlu2 %1561  ;;  %v1558_v62 = vpop.permute.xlu1 %1557 }
 0x3b3   : > { %v2166_v11 = vpop.permute.xlu0 %2165 }
 0x3b4   : > { %v2167_v14 = vunpack.i.l.bf16 %v2166_v11  ;;  %v2168_v2 = vunpack.i.h.bf16 %v2166_v11 }
 0x3b6   : > { %v1619_v11 = vsel %vm627_vm0, %v2168_v2, %v1616_v32  ;;  %v2173_v2 = vunpack.i.h.bf16 %v3407_v56 }
 0x3b8   : > { %v2176_v18 = vpop.permute.xlu2 %2175 }
 0x3b9   : > { %v2177_v12 = vunpack.i.l.bf16 %v2176_v18  ;;  %v2178_v10 = vunpack.i.h.bf16 %v2176_v18  ;;  %v2157_v18 = vunpack.i.l.bf16 %v3266_v35 }
 0x3bb   : > { %v1640_v33 = vpop.permute.xlu0 %1639 }
 0x3bc   : > { %v1643_v8 = vsel %vm627_vm0, %v2177_v12, %v1640_v33  ;;  %1998 = vmatpush.msk.msra.mxu1 %vm627_vm0, %v1640_v33  ;;  %v1641_v12 = vsel %vm627_vm0, %v2167_v14, %v1632_v47  ;;  %v2158_v33 = vunpack.i.h.bf16 %v3266_v35 }
 0x3bd   : > { %1709 = vmatpush.msrb.mxu3 %v1643_v8 }
 0x3be   : > { %v1617_v35 = vsel %vm627_vm0, %v2158_v33, %v3318_v59 }
 0x3c0   : > { %v2181_v21 = vpop.permute.xlu2 %2180 }
 0x3c7   : > { %v1636_v0 = vpop.permute.xlu1 %1635 }
 0x3c8   : > { %v1566_v29 = vpop.permute.xlu2 %1565  ;;  %1999 = vmatpush.msk.msra.mxu1 %vm627_vm0, %v1636_v0  ;;  %v1642_v42 = vsel %vm627_vm0, %v2178_v10, %v1636_v0 }
 0x3c9   : > { %1972 = vmatpush.msk.msrb.mxu2 %vm2467_vm14, %v1566_v29  ;;  %1710 = vmatpush.msrb.mxu3 %v1642_v42  ;;  %v2172_v42 = vunpack.i.l.bf16 %v3407_v56  ;;  %v1541_v56 = vsel %vm596_vm13, %v3268_v17, %v2173_v2  ;;  %v363_v2 = vld [vmem:[%s3699_s6 + $0x8] sm:$0xff] }
 0x3ca   : > { %2000 = vmatpush.msk.msra.mxu1 %vm627_vm0, %v1632_v47  ;;  %v1618_v47 = vsel %vm627_vm0, %v2157_v18, %v3304_v53 }
 0x3cb   : > { %1974 = vmatpush.msk.msrb.mxu2 %vm2467_vm14, %v1562_v30  ;;  %1711 = vmatpush.msrb.mxu3 %v1641_v12  ;;  %v2182_v12 = vunpack.i.l.bf16 %v2181_v21 }
 0x3cc   : > { %2001 = vmatpush.msk.msra.mxu1 %vm627_vm0, %v1616_v32 }
 0x3cd   : > { %1976 = vmatpush.msk.msrb.mxu2 %vm2467_vm14, %v1558_v62  ;;  %1712 = vmatpush.msrb.mxu3 %v1619_v11  ;;  %v1569_v11 = vsel %vm596_vm13, %v1558_v62, %v2172_v42  ;;  %v2162_v62 = vunpack.i.l.bf16 %v3409_v36 }
 0x3ce   : > { %2002 = vmatpush.msk.msra.mxu1 %vm627_vm0, %v3304_v53 }
 0x3cf   : > { %1978 = vmatpush.msk.msrb.mxu2 %vm2467_vm14, %v3268_v17  ;;  %v1588_v8 = vpop.permute.xlu0 %1587  ;;  %1713 = vmatpush.msrb.mxu3 %v1618_v47  ;;  %v3434_v14 = vpop.permute.xlu1 %1511 }
 0x3d0   : > { %v2186_v32 = vpop.permute.xlu2 %2185  ;;  %2003 = vmatpush.msk.msra.mxu1 %vm627_vm0, %v3318_v59 }
 0x3d1   : > { %v2188_v10 = vunpack.i.h.bf16 %v2186_v32  ;;  %v2187_v0 = vunpack.i.l.bf16 %v2186_v32  ;;  %1980 = vmatpush.msk.msrb.mxu2 %vm2467_vm14, %v3285_v4  ;;  %1714 = vmatpush.msrb.mxu3 %v1617_v35  ;;  %v1540_v32 = vsel %vm596_vm13, %v3285_v4, %v2182_v12  ;;  %v515_v12 = vsel %vm504_vm5, 0.0, %v3152_v39 }
 0x3d3   : > { %1982 = vmatpush.msk.msrb.mxu2 %vm2467_vm14, %v3258_v58  ;;  %v1571_v53 = vsel %vm596_vm13, %v1566_v29, %v2187_v0  ;;  %v1570_v59 = vsel %vm596_vm13, %v1562_v30, %v2188_v10  ;;  %v2183_v29 = vunpack.i.h.bf16 %v2181_v21  ;;  %v362_v21 = vld [vmem:[%s3699_s6] sm:$0xff]  ;;  %v2163_v0 = vunpack.i.h.bf16 %v3409_v36  ;;  %v364_v36 = vld [vmem:[%s3699_s6 + $0x10] sm:$0xff] }
 0x3d4   : > { %1737 = vmatpush.msrb.mxu0 %v1571_v53 }
 0x3d5   : > { %1984 = vmatpush.msk.msrb.mxu2 %vm2467_vm14, %v3434_v14  ;;  %v1539_v30 = vsel %vm596_vm13, %v3258_v58, %v2183_v29  ;;  %v1594_v58 = vsel %vm627_vm0, %v2163_v0, %v1588_v8 }
 0x3d6   : > { %1738 = vmatpush.msrb.mxu0 %v1570_v59 }
 0x3d7   : > { %v1582_v18 = vpop.permute.xlu0 %1581  ;;  %v1584_v33 = vpop.permute.xlu1 %1583 }
 0x3d8   : > { %v1508_v47 = vpop.permute.xlu2 %1507  ;;  %1739 = vmatpush.msrb.mxu0 %v1569_v11  ;;  %v1593_v53 = vsel %vm627_vm0, %v1582_v18, %v1584_v33  ;;  %v525_v18 = vsel %vm517_vm6, %v515_v12, 0.0  ;;  %v381_v12 = vld [vmem:[%s3696_s3 + $0x10] sm:$0xff] }
 0x3d9   : > { %1986 = vmatpush.msk.msrb.mxu2 %vm2467_vm14, %v1508_v47 }
 0x3da   : > { %1740 = vmatpush.msrb.mxu0 %v1541_v56  ;;  %v531_v56 = vadd.f32 %v525_v18, %v3737_v48 }
 0x3dc   : > { %1741 = vmatpush.msrb.mxu0 %v1540_v32 }
 0x3de   : > { %1742 = vmatpush.msrb.mxu0 %v1539_v30 }
 0x3df   : > { %v1504_v35 = vpop.permute.xlu0 %1503  ;;  %v1592_v10 = vpop.permute.xlu1 %1591 }
 0x3e0   : > { %1988 = vmatpush.msk.msrb.mxu2 %vm2467_vm14, %v1504_v35  ;;  %2004 = vmatpush.msk.msra.mxu1 %vm627_vm0, %v1592_v10  ;;  %v1595_v17 = vsel %vm627_vm0, %v2162_v62, %v1592_v10  ;;  %v1506_v4 = vpop.permute.xlu2 %1505 }
 0x3e1   : > { %1715 = vmatpush.msrb.mxu3 %v1595_v17  ;;  %1694 = vmatmul.f32.vlgmr.msrb.gmra.mxu2 %v362_v21 }
 0x3e2   : > { %2005 = vmatpush.msk.msra.mxu1 %vm627_vm0, %v1588_v8 }
 0x3e3   : > { %1716 = vmatpush.msrb.mxu3 %v1594_v58 }
 0x3e4   : > { %2006 = vmatpush.msk.msra.mxu1 %vm627_vm0, %v1584_v33  ;;  %v1515_v33 = vsel %vm596_vm13, %v1504_v35, %v1506_v4 }
 0x3e5   : > { %1717 = vmatpush.msrb.mxu3 %v1593_v53 }
 0x3e6   : > { %2007 = vmatpush.msk.msra.mxu1 %vm561_vm12, %v3312_v55  ;;  %v516_v55 = vsel %vm504_vm5, 0.0, %v3260_v49 }
 0x3e7   : > { %v540_v63 = vpop.permute.xlu0 %539  ;;  %1989 = vmatpush.msk.msrb.mxu3 %vm560_vm8, %v3338_v40  ;;  %v2191_v8 = vpop.permute.xlu1 %2190 }
 0x3e8   : > { %v2193_v42 = vunpack.i.h.bf16 %v2191_v8  ;;  %v2192_v59 = vunpack.i.l.bf16 %v2191_v8  ;;  %2008 = vmatpush.msk.msra.mxu1 %vm561_vm12, %v3327_v20  ;;  %v527_v20 = vsel %vm517_vm6, %v516_v55, 0.0  ;;  %v544_v11 = vpop.permute.xlu2 %543  ;;  %v371_v8 = vld [vmem:[%s3698_s5 + $0x8] sm:$0xff]  ;;  %v376_v55 = vld [vmem:[%s3700_s7] sm:$0xff] }
 0x3e9   : > { %1990 = vmatpush.msk.msrb.mxu3 %vm560_vm8, %v3324_v22  ;;  %1697 = vmatmul.f32.gmra.mxu2 %v364_v36  ;;  %v526_v22 = vsel %vm518_vm15, %v3156_v16, 0.0  ;;  %v533_v29 = vadd.f32 %v527_v20, %v3740_v38 }
 0x3ea   : > { %1991 = vmatmul.msk.f32.vlgmr.msrb.gmra.mxu3 %vm1668_vm3, %v363_v2  ;;  %v1517_v40 = vsel %vm596_vm13, %v3434_v14, %v2192_v59  ;;  %2009 = vmatmul.msk.f32.vlgmr.msra.gmra.mxu1 %vm1668_vm3, %v363_v2  ;;  %v1516_v39 = vsel %vm596_vm13, %v1508_v47, %v2193_v42  ;;  %v366_v14 = vld [vmem:[%s3699_s6 + $0x20] sm:$0xff]  ;;  %v365_v47 = vld [vmem:[%s3699_s6 + $0x18] sm:$0xff]  ;;  %v532_v16 = vadd.f32 %v526_v22, %v3738_v43  ;;  %v378_v42 = vld [vmem:[%s3700_s7 + $0x10] sm:$0xff] }
 0x3eb   : > { %1743 = vmatpush.msrb.mxu0 %v1517_v40  ;;  %v370_v2 = vld [vmem:[%s3698_s5] sm:$0xff]  ;;  %v377_v59 = vld [vmem:[%s3700_s7 + $0x8] sm:$0xff] }
 0x3ed   : > { %1744 = vmatpush.msrb.mxu0 %v1516_v39 }
 0x3ef   : > { %v546_v32 = vpop.permute.xlu0 %545  ;;  %v542_v30 = vpop.permute.xlu1 %541  ;;  %1745 = vmatpush.msrb.mxu0 %v1515_v33 }
 0x3f0   : > { %v550_v62 = vsel %vm547_vm7, %v544_v11, %v546_v32  ;;  %v549_v35 = vsel %vm547_vm7, %v540_v63, %v542_v30  ;;  %v558_v10 = vsel %vm547_vm7, %v542_v30, 0.0  ;;  %1746 = vmatmul.f32.vlgmr.msrb.gmra.mxu0 %v362_v21  ;;  %v507_v21 = vsel %vm504_vm5, %v3260_v49, %v3256_v5  ;;  %v367_v5 = vld [vmem:[%s3699_s6 + $0x28] sm:$0xff]  ;;  %v587_v40 = vpop.permute.xlu2 %586 }
 0x3f1   : > { %v570_v38 = vsel %vm560_vm8, %v550_v62, 0.0  ;;  %v568_v48 = vsel %vm560_vm8, %v549_v35, 0.0  ;;  %v569_v0 = vsel %vm561_vm12, %v558_v10, 0.0  ;;  %1700 = vmatmul.f32.gmra.mxu2 %v366_v14  ;;  %v559_v60 = vsel %vm547_vm7, %v546_v32, 0.0 }
 0x3f2   : > { %v3528_v17 = vadd.f32 %v570_v38, %v533_v29  ;;  %v3530_v43 = vadd.f32 %v568_v48, %v531_v56  ;;  %v3532_v58 = vadd.f32 %v569_v0, %v532_v16  ;;  %1992 = vmatmul.msk.f32.gmra.mxu3 %vm1668_vm3, %v365_v47  ;;  %2010 = vmatmul.msk.f32.gmra.mxu1 %vm1668_vm3, %v365_v47  ;;  %v528_v4 = vsel %vm518_vm15, %v507_v21, 0.0 }
 0x3f3   : > { %v571_v49 = vsel %vm561_vm12, %v559_v60, 0.0  ;;  %v534_v53 = vadd.f32 %v528_v4, %v3017_v31  ;;  %v380_v31 = vld [vmem:[%s3696_s3 + $0x8] sm:$0xff] }
 0x3f4   : > { %592 = vrot.lane.b32.xlu2 %v3528_v17, %s2207_s28  ;;  %590 = vrot.lane.b32.xlu1 %v3532_v58, %s2207_s28 }
 0x3f5   : > { %588 = vrot.lane.b32.xlu0 %v3530_v43, %s2207_s28  ;;  %v3555_v63 = vadd.f32 %v571_v49, %v534_v53 }
 0x3f7   : > { %v585_v39 = vpop.permute.xlu1 %584 }
 0x3f8   : > { %1749 = vmatmul.f32.gmra.mxu0 %v364_v36  ;;  %v372_v36 = vld [vmem:[%s3698_s5 + $0x10] sm:$0xff] }
 0x3fa   : > { %1993 = vmatmul.msk.f32.gmra.mxu3 %vm1668_vm3, %v367_v5  ;;  %2011 = vmatmul.msk.f32.gmra.mxu1 %vm1668_vm3, %v367_v5 }
 0x3fc   : > { %617 = vrot.lane.b32.xlu2 %v3403_v1, %s2210_s9  ;;  %615 = vrot.lane.b32.xlu1 %v3388_v37, %s2210_s9 }
 0x3fd   : > { %594 = vrot.lane.b32.xlu0 %v3555_v63, %s2207_s28 }
 0x400   : > { %1752 = vmatmul.f32.gmra.mxu0 %v366_v14 }
 0x404   : > { %623 = vrot.lane.b32.xlu2 %v3528_v17, %s2210_s9  ;;  %621 = vrot.lane.b32.xlu1 %v3532_v58, %s2210_s9 }
 0x405   : > { %619 = vrot.lane.b32.xlu0 %v3530_v43, %s2210_s9 }
 0x40c   : > { %653 = vperm.xlu2 %2153, %v380_v31   ;;  %648 = vperm.xlu1 %2152, %v379_v19  }
 0x40d   : > { %625 = vrot.lane.b32.xlu0 %v3555_v63, %s2210_s9 }
 0x414   : > { %1115 = vperm.xlu2 %2153, %v372_v36   ;;  %1110 = vperm.xlu1 %2152, %v371_v8   ;;  %v606_v8 = vsel %vm596_vm13, 0.0, %v585_v39 }
 0x415   : > { %1105 = vperm.xlu0 %2051, %v370_v2  }
 0x41c   : > { %1665 = vperm.xlu2 %2153, %v378_v42   ;;  %1660 = vperm.xlu1 %2152, %v377_v59  }
 0x41d   : > { %1655 = vperm.xlu0 %2051, %v376_v55  }
 0x425   : > { %658 = vperm.xlu0 %2051, %v381_v12   ;;  %v609_v12 = vadd.f32 %v606_v8, %v3388_v37  ;;  %v3743_v8 = vld [vmem:[#allocation9_spill] sm:$0xff] }
 0x44e   : > { %v3599_v20 = vpop.permute.xlu2 %592 }
 0x456   : > { %v618_v18 = vpop.permute.xlu2 %617 }
 0x457   : > { %v637_v59 = vsel %vm627_vm0, %v618_v18, 0.0 }
 0x45e   : > { %v3601_v22 = vpop.permute.xlu2 %623 }
 0x464   : > { %v3603_v11 = vpop.f32.mrf.mxu2 }
 0x466   : > { %v654_v33 = vpop.permute.xlu2 %653  ;;  %v591_v14 = vpop.permute.xlu1 %590 }
 0x467   : > { %v589_v29 = vpop.permute.xlu0 %588  ;;  %v3605_v56 = vpop.f32.mrf.mxu1 }
 0x468   : > { %v598_v60 = vsel %vm596_vm13, %v589_v29, %v591_v14 }
 0x46c   : > { %v3613_v10 = vpop.f32.mrf.mxu2 }
 0x46d   : > { %v3607_v32 = vpop.f32.mrf.mxu3  ;;  %v3609_v30 = vpop.f32.mrf.mxu0 }
 0x46e   : > { %v1116_v47 = vpop.permute.xlu2 %1115  ;;  %v616_v16 = vpop.permute.xlu1 %615 }
 0x46f   : > { %v1175_v62 = vadd.f32 %v3170_v15, %v1116_v47  ;;  %v1315_v35 = vadd.f32 %v3209_v51, %v1116_v47  ;;  %v3615_v38 = vpop.permute.xlu0 %594  ;;  %v3619_v21 = vpop.f32.mrf.mxu1  ;;  %v607_v51 = vsel %vm596_vm13, 0.0, %v589_v29 }
 0x470   : > { %v611_v19 = vadd.f32 %v607_v51, %v3530_v43  ;;  %v628_v43 = vsel %vm627_vm0, %v616_v16, %v618_v18 }
 0x471   : > { %v1210_v48 = vadd.f32 %v3172_v52, %v1175_v62  ;;  %v1350_v0 = vadd.f32 %v3214_v3, %v1315_v35  ;;  %v612_v3 = vadd.f32 %v598_v60, %v3532_v58  ;;  %v640_v62 = vadd.f32 %v628_v43, %v609_v12 }
 0x473   : > { %v1245_v4 = vadd.f32 %v3178_v28, %v1210_v48  ;;  %v1385_v15 = vadd.f32 %v3235_v13, %v1350_v0  ;;  %v597_v13 = vsel %vm596_vm13, %v585_v39, %v587_v40 }
 0x474   : > { %v1701_v42 = vpop.f32.mrf.mxu2  ;;  %v610_v14 = vadd.f32 %v597_v13, %v3403_v1 }
 0x475   : > { %v1280_v5 = vadd.f32 %v3160_v9, %v1245_v4  ;;  %v1420_v49 = vadd.f32 %v3211_v41, %v1385_v15  ;;  %v3627_v53 = vpop.f32.mrf.mxu3  ;;  %v1750_v52 = vpop.f32.mrf.mxu0 }
 0x476   : > { %v622_v31 = vpop.permute.xlu1 %621  ;;  %v1666_v2 = vpop.permute.xlu2 %1665  ;;  %v641_v47 = vadd.f32 %v637_v59, %v610_v14 }
 0x477   : > { %1790 = vst [vmem:[%s2286_s22 + $0x40] sm:$0xff] %v1280_v5  ;;  %v620_v36 = vpop.permute.xlu0 %619  ;;  %v638_v28 = vsel %vm627_vm0, %v622_v31, 0.0  ;;  %v1702_v39 = vadd.f32 %v1701_v42, %v1666_v2  ;;  %v1779_v29 = vpop.f32.mrf.mxu1 }
 0x478   : > { %1791 = vst [vmem:[%s2286_s22 + $0x48] sm:$0xff] %v1420_v49  ;;  %v629_v9 = vsel %vm627_vm0, %v620_v36, %v622_v31  ;;  %v643_v41 = vadd.f32 %v638_v28, %v612_v3 }
 0x479   : > { %v642_v58 = vadd.f32 %v629_v9, %v611_v19 }
 0x47a   : > { %v664_v55 = vadd.f32 %v654_v33, %v643_v41 }
 0x47b   : > { %v663_v40 = vadd.f32 %v654_v33, %v642_v58 }
 0x47c   : > { %1801 = vst [vmem:[%s2286_s22 + $0x98] sm:$0xff] %v664_v55 }
 0x47d   : > { %1800 = vst [vmem:[%s2286_s22 + $0x90] sm:$0xff] %v663_v40  ;;  %v1727_v35 = vpop.f32.mrf.mxu3  ;;  %v1753_v48 = vpop.f32.mrf.mxu0 }
 0x47e   : > { %v1728_v0 = vadd.f32 %v1727_v35, %v1702_v39  ;;  %v1754_v18 = vadd.f32 %v1753_v48, %v1666_v2  ;;  %v649_v16 = vpop.permute.xlu1 %648 }
 0x47f   : > { %v626_v60 = vpop.permute.xlu0 %625  ;;  %v661_v37 = vadd.f32 %v649_v16, %v640_v62  ;;  %v662_v4 = vadd.f32 %v649_v16, %v641_v47 }
 0x480   : > { %1796 = vst [vmem:[%s2286_s22 + $0x70] sm:$0xff] %v1728_v0  ;;  %v1780_v1 = vadd.f32 %v1779_v29, %v1754_v18  ;;  %v639_v41 = vsel %vm627_vm0, %v626_v60, 0.0 }
 0x481   : > { %1798 = vst [vmem:[%s2286_s22 + $0x80] sm:$0xff] %v661_v37 }
 0x482   : > { %1799 = vst [vmem:[%s2286_s22 + $0x88] sm:$0xff] %v662_v4 }
 0x483   : > { %1797 = vst [vmem:[%s2286_s22 + $0x78] sm:$0xff] %v1780_v1 }
 0x486   : > { %v1111_v33 = vpop.permute.xlu1 %1110 }
 0x487   : > { %v1106_v15 = vpop.permute.xlu0 %1105  ;;  %v1172_v51 = vadd.f32 %v3166_v46, %v1111_v33  ;;  %v1312_v5 = vadd.f32 %v3196_v57, %v1111_v33 }
 0x488   : > { %v1169_v49 = vadd.f32 %v3162_v44, %v1106_v15  ;;  %v1309_v3 = vadd.f32 %v3183_v26, %v1106_v15 }
 0x489   : > { %v1207_v31 = vadd.f32 %v3168_v24, %v1172_v51  ;;  %v1347_v19 = vadd.f32 %v3198_v45, %v1312_v5 }
 0x48a   : > { %v1204_v36 = vadd.f32 %v3164_v54, %v1169_v49  ;;  %v1344_v28 = vadd.f32 %v3186_v61, %v1309_v3 }
 0x48b   : > { %v1242_v13 = vadd.f32 %v3176_v50, %v1207_v31  ;;  %v1382_v46 = vadd.f32 %v3230_v7, %v1347_v19 }
 0x48c   : > { %v1239_v57 = vadd.f32 %v3174_v34, %v1204_v36  ;;  %v1379_v44 = vadd.f32 %v3224_v27, %v1344_v28 }
 0x48d   : > { %v1277_v26 = vadd.f32 %v3158_v23, %v1242_v13  ;;  %v1417_v54 = vadd.f32 %v3743_v8, %v1382_v46 }
 0x48e   : > { %v1274_v24 = vadd.f32 %v3150_v6, %v1239_v57  ;;  %v1414_v45 = vadd.f32 %v3181_v25, %v1379_v44  ;;  %v1661_v9 = vpop.permute.xlu1 %1660  ;;  %v608_v6 = vsel %vm596_vm13, 0.0, %v3599_v20  ;;  %v599_v25 = vsel %vm596_vm13, %v3599_v20, %v3615_v38 }
 0x48f   : > { %1788 = vst [vmem:[%s2286_s22 + $0x30] sm:$0xff] %v1277_v26  ;;  %v1656_v61 = vpop.permute.xlu0 %1655  ;;  %v1699_v50 = vadd.f32 %v3613_v10, %v1661_v9  ;;  %v1751_v7 = vadd.f32 %v1750_v52, %v1661_v9  ;;  %v630_v52 = vsel %vm627_vm0, %v3601_v22, %v626_v60  ;;  %v613_v20 = vadd.f32 %v608_v6, %v3528_v17 }
 0x490   : > { %1786 = vst [vmem:[%s2286_s22 + $0x20] sm:$0xff] %v1274_v24  ;;  %v1696_v34 = vadd.f32 %v3603_v11, %v1656_v61  ;;  %v1748_v23 = vadd.f32 %v3609_v30, %v1656_v61  ;;  %v614_v38 = vadd.f32 %v599_v25, %v3555_v63 }
 0x491   : > { %1787 = vst [vmem:[%s2286_s22 + $0x28] sm:$0xff] %v1414_v45  ;;  %v1725_v27 = vadd.f32 %v3627_v53, %v1699_v50  ;;  %v1777_v30 = vadd.f32 %v3619_v21, %v1751_v7 }
 0x492   : > { %1789 = vst [vmem:[%s2286_s22 + $0x38] sm:$0xff] %v1417_v54  ;;  %v1722_v10 = vadd.f32 %v3607_v32, %v1696_v34  ;;  %v1774_v11 = vadd.f32 %v3605_v56, %v1748_v23  ;;  %v644_v32 = vadd.f32 %v630_v52, %v613_v20  ;;  %v645_v53 = vadd.f32 %v639_v41, %v614_v38 }
 0x493   : > { %1794 = vst [vmem:[%s2286_s22 + $0x60] sm:$0xff] %v1725_v27 }
 0x494   : > { %1792 = vst [vmem:[%s2286_s22 + $0x50] sm:$0xff] %v1722_v10 }
 0x495   : > { %1793 = vst [vmem:[%s2286_s22 + $0x58] sm:$0xff] %v1774_v11 }
 0x496   : > { %1795 = vst [vmem:[%s2286_s22 + $0x68] sm:$0xff] %v1777_v30 }
 0x497   : > { %v659_v2 = vpop.permute.xlu0 %658 }
 0x498   : > { %v665_v56 = vadd.f32 %v659_v2, %v644_v32  ;;  %v666_v42 = vadd.f32 %v659_v2, %v645_v53 }
 0x49a   : > { %1802 = vst [vmem:[%s2286_s22 + $0xa0] sm:$0xff] %v665_v56 }
 0x49b   : > { %1803 = vst [vmem:[%s2286_s22 + $0xa8] sm:$0xff] %v666_v42 }
 0x49c PF: > { %s18_s27 = sadd.s32 1, %s2200_s27  }
 0x49d   : > { %p15_p4 = scmp.ge.s32.totalorder %s18_s27, 4  }
 0x49f   :  { %17 = sbr.rel (!%p15_p4) target bundleno = 1 (0x1), region = 82 }

</bundles_post_ra>
